<compile_context>
chip_gen: v5e
topology: v5e:2x2
jax: 0.10.0
libtpu: 0.0.40
codegen_flags: <defaults>
</compile_context>

<pallas_src>
import functools

import jax
import jax.numpy as jnp
from jax.experimental import pallas as pl
from jax.experimental.pallas import tpu as pltpu


def _adafm_conv_kernel(x_ref, w_ref, g_ref, be_ref, bias_ref, o_ref, xpad_ref,
                       *, use_single_matmul):
    # x_ref   : (Bblk, H, W, Cin)        unpadded NHWC activation block
    # w_ref   : (3, 3, Cin, TCout)       raw conv weight tile, HWIO
    # g_ref   : (Cin, TCout)             gamma (transposed)
    # be_ref  : (Cin, TCout)             beta  (transposed)
    # bias_ref: (1, TCout)               b + b_i tile (f32)
    # o_ref   : (Bblk, H*W, TCout)       lane-dense output slab
    # xpad_ref: (Bblk, H+2, W+2, Cin)    VMEM scratch (compute dtype), fused pad
    bblk, hh, ww, cin = x_ref.shape
    hw, tcout = o_ref.shape[1], o_ref.shape[2]

    # --- hoisted per-batch-block work: fused zero-pad + interior copy -------
    # Grid = (batch blocks [outer, "parallel"], Cout tiles [inner, "arbitrary"]).
    # The x block index only depends on the batch axis, so the activation tile
    # is fetched once per batch block; the padded copy is built once per batch
    # block as well (program_id(1) == 0 marks the start of each Cout sweep).
    @pl.when(pl.program_id(1) == 0)
    def _fill_padded_input():
        zrow = jnp.zeros((bblk, 1, ww + 2, cin), dtype=xpad_ref.dtype)
        zcol = jnp.zeros((bblk, hh + 2, 1, cin), dtype=xpad_ref.dtype)
        # Zero only the halo border; the interior is fully rewritten below.
        xpad_ref[:, 0:1, :, :] = zrow
        xpad_ref[:, hh + 1:hh + 2, :, :] = zrow
        xpad_ref[:, :, 0:1, :] = zcol
        xpad_ref[:, :, ww + 1:ww + 2, :] = zcol
        xpad_ref[:, 1:1 + hh, 1:1 + ww, :] = x_ref[...].astype(xpad_ref.dtype)

    # --- AdaFM modulation: W_i = gamma * W + beta (cheap, per Cout tile) ----
    w_mod = (g_ref[...][None, None, :, :] * w_ref[...]
             + be_ref[...][None, None, :, :]).astype(xpad_ref.dtype)

    if use_single_matmul:
        # im2col: single lane-axis concat of the 9 shifted taps (batch kept in
        # place, no second axis-0 concat), then ONE MXU matmul with K = 9*Cin.
        cols4 = jnp.concatenate(
            [xpad_ref[:, kh:kh + hh, kw:kw + ww, :]
             for kh in range(3) for kw in range(3)], axis=-1)
        cols = cols4.reshape(bblk * hw, 9 * cin)
        acc = jnp.dot(cols, w_mod.reshape(9 * cin, tcout),
                      preferred_element_type=jnp.float32)
    else:
        # Bounded-VMEM variant: 9 accumulating matmuls (K = Cin each); no
        # 9x-expanded cols slab is ever materialized (v7x MRB accumulates
        # in place, so the extra drains are nearly free).
        acc = None
        for kh in range(3):
            for kw in range(3):
                tap = xpad_ref[:, kh:kh + hh, kw:kw + ww, :].reshape(
                    bblk * hw, cin)
                part = jnp.dot(tap, w_mod[kh, kw],
                               preferred_element_type=jnp.float32)
                acc = part if acc is None else acc + part

    acc = acc + bias_ref[...]                       # (1, TCout) broadcast, f32
    o_ref[...] = acc.reshape(bblk, hw, tcout).astype(o_ref.dtype)


def adafm_svd_forward(x, W, b, b_i, style_gama, style_beta,
                      *, block_n=None, block_cout=None, compute_dtype=None,
                      cols_budget_bytes=12 * 1024 * 1024):
    """x: (N, Cin, H, W) NCHW; W: (Cout, Cin, 3, 3) OIHW; b, b_i: (Cout,);
    style_gama/style_beta: (Cout, Cin, 1, 1).
    Returns (N, Cout, H, W), matching F.conv2d(x, gamma*W+beta, b+b_i, 1, 1).

    Note: the fast path uses bf16 MXU operands with f32 accumulation; pass
    compute_dtype=jnp.float32 for an f32-operand path (still TPU default
    matmul precision — tolerances in the test reflect this)."""
    N, Cin, H, Wd = x.shape
    Cout = W.shape[0]
    HW = H * Wd

    # Fast path by default: bf16 operands (f32 accumulation) ~3x MXU rate.
    if compute_dtype is None:
        compute_dtype = jnp.bfloat16 if x.dtype == jnp.float32 else x.dtype

    # --- channel padding for lane alignment ---------------------------------
    # Cout -> multiple of 128: lane-dense (unmasked) output stores.
    Cout_p = Cout if Cout % 128 == 0 else ((Cout + 127) // 128) * 128
    # Cin -> multiple of 128 only at production sizes (lane-aligned im2col
    # concat); tiny Cin is left as-is to avoid wasting MXU passes.
    Cin_p = Cin if (Cin % 128 == 0 or Cin <= 64) else ((Cin + 127) // 128) * 128

    # Layout plumbing only (transposes + zero pads); padding of the spatial
    # halo and the AdaFM modulation happen inside the kernel.
    x_nhwc = jnp.transpose(x, (0, 2, 3, 1))                       # (N, H, W, Cin)
    w_hwio = jnp.transpose(W, (2, 3, 1, 0))                       # (3, 3, Cin, Cout)
    g_io = jnp.transpose(style_gama.reshape(Cout, Cin), (1, 0))   # (Cin, Cout)
    be_io = jnp.transpose(style_beta.reshape(Cout, Cin), (1, 0))  # (Cin, Cout)
    bias = (b + b_i).reshape(1, Cout).astype(jnp.float32)

    if Cin_p != Cin:
        dc = Cin_p - Cin
        x_nhwc = jnp.pad(x_nhwc, ((0, 0), (0, 0), (0, 0), (0, dc)))
        w_hwio = jnp.pad(w_hwio, ((0, 0), (0, 0), (0, dc), (0, 0)))
        g_io = jnp.pad(g_io, ((0, dc), (0, 0)))
        be_io = jnp.pad(be_io, ((0, dc), (0, 0)))
    if Cout_p != Cout:
        do = Cout_p - Cout
        w_hwio = jnp.pad(w_hwio, ((0, 0), (0, 0), (0, 0), (0, do)))
        g_io = jnp.pad(g_io, ((0, 0), (0, do)))
        be_io = jnp.pad(be_io, ((0, 0), (0, do)))
        bias = jnp.pad(bias, ((0, 0), (0, do)))

    # --- tile selection ------------------------------------------------------
    if block_cout is None:
        # Prefer 256 for v6e/v7x's 256-wide MXU; pass block_cout=128 on v5e
        # (128x128 MXU) for the same MXU efficiency at half the VMEM.
        block_cout = Cout_p
        for cand in (256, 128):
            if Cout_p % cand == 0:
                block_cout = cand
                break
    assert Cout_p % block_cout == 0

    if block_n is None:
        target = max(1, -(-1024 // HW))     # fold batch into matmul M (~1024 rows)
        block_n = 1
        for d in range(min(N, target), 0, -1):
            if N % d == 0:
                block_n = d
                break
        # Keep at least two batch blocks when possible so the outer "parallel"
        # axis can feed both v7x TensorCores.
        if N > 1 and N // block_n == 1 and HW >= 256:
            for d in range(N // 2, 0, -1):
                if N % d == 0:
                    block_n = d
                    break
    assert N % block_n == 0

    # --- im2col-vs-accumulate choice and VMEM budget -------------------------
    c_sz = jnp.dtype(compute_dtype).itemsize
    x_sz = jnp.dtype(x_nhwc.dtype).itemsize
    w_sz = jnp.dtype(w_hwio.dtype).itemsize
    cols_bytes = block_n * HW * 9 * Cin_p * c_sz
    use_single_matmul = cols_bytes <= cols_budget_bytes

    xb = block_n * H * Wd * Cin_p * x_sz
    wb = 9 * Cin_p * block_cout * w_sz + 2 * Cin_p * block_cout * 4 + block_cout * 4
    ob = block_n * HW * block_cout * x_sz
    xpad_b = block_n * (H + 2) * (Wd + 2) * Cin_p * c_sz
    acc_b = block_n * HW * block_cout * 4
    est = 2 * (xb + wb + ob) + xpad_b + acc_b       # inputs/outputs double-buffered
    if use_single_matmul:
        est += cols_bytes

    try:
        vmem_cap = int(getattr(pltpu.get_tpu_info(), "vmem_capacity_bytes",
                               64 * 1024 * 1024))
    except Exception:  # pragma: no cover - conservative fallback off-TPU
        vmem_cap = 64 * 1024 * 1024
    cap = int(0.85 * vmem_cap)                      # ~54 MiB on v7x, ~109 MiB v5e/v6e
    vmem_limit = int(min(cap, max(32 * 1024 * 1024, int(1.3 * est))))

    grid = (N // block_n, Cout_p // block_cout)     # (batch blocks, Cout tiles)
    kernel = functools.partial(_adafm_conv_kernel,
                               use_single_matmul=use_single_matmul)

    out_flat = pl.pallas_call(
        kernel,
        out_shape=jax.ShapeDtypeStruct((N, HW, Cout_p), x.dtype),
        grid_spec=pltpu.PrefetchScalarGridSpec(
            num_scalar_prefetch=0,
            grid=grid,
            in_specs=[
                # x depends only on the batch axis -> fetched once per block.
                pl.BlockSpec((block_n, H, Wd, Cin_p), lambda n, j: (n, 0, 0, 0)),
                pl.BlockSpec((3, 3, Cin_p, block_cout), lambda n, j: (0, 0, 0, j)),
                pl.BlockSpec((Cin_p, block_cout), lambda n, j: (0, j)),
                pl.BlockSpec((Cin_p, block_cout), lambda n, j: (0, j)),
                pl.BlockSpec((1, block_cout), lambda n, j: (0, j)),
            ],
            out_specs=pl.BlockSpec((block_n, HW, block_cout),
                                   lambda n, j: (n, 0, j)),
            scratch_shapes=[
                pltpu.VMEM((block_n, H + 2, Wd + 2, Cin_p), compute_dtype),
            ]),
        compiler_params=pltpu.CompilerParams(
            # Batch blocks may be split across TensorCores; the Cout axis must
            # stay "arbitrary" so every core sees j == 0 and (re)builds the
            # hoisted padded-input scratch for each of its batch blocks.
            dimension_semantics=("parallel", "arbitrary"),
            vmem_limit_bytes=vmem_limit),
    )(x_nhwc, w_hwio, g_io, be_io, bias)

    out_nhwc = out_flat.reshape(N, H, Wd, Cout_p)   # free reshape in the wrapper
    out = jnp.transpose(out_nhwc, (0, 3, 1, 2))
    if Cout_p != Cout:
        out = out[:, :Cout]
    return out


if __name__ == "__main__":
    key = jax.random.PRNGKey(0)

    def reference(x, W, b, b_i, style_gama, style_beta):
        Cout, Cin = W.shape[0], W.shape[1]
        gamma = style_gama.reshape(Cout, Cin)
        beta = style_beta.reshape(Cout, Cin)
        W_i = gamma[:, :, None, None] * W + beta[:, :, None, None]
        out = jax.lax.conv_general_dilated(
            x, W_i, window_strides=(1, 1), padding=((1, 1), (1, 1)),
            dimension_numbers=("NCHW", "OIHW", "NCHW"),
            precision=jax.lax.Precision.HIGHEST,
            preferred_element_type=jnp.float32)
        return out + (b + b_i)[None, :, None, None]

    def make_inputs(k, N, Cin, Cout, H, Wd):
        ks = jax.random.split(k, 6)
        x = jax.random.normal(ks[0], (N, Cin, H, Wd), jnp.float32)
        W = jax.random.normal(ks[1], (Cout, Cin, 3, 3), jnp.float32) * 0.1
        b = jax.random.normal(ks[2], (Cout,), jnp.float32) * 0.1
        b_i = jax.random.normal(ks[3], (Cout,), jnp.float32) * 0.1
        sg = 1.0 + 0.1 * jax.random.normal(ks[4], (Cout, Cin, 1, 1), jnp.float32)
        sb = 0.05 * jax.random.normal(ks[5], (Cout, Cin, 1, 1), jnp.float32)
        return x, W, b, b_i, sg, sb

    k1, k2 = jax.random.split(key)

    # --- Config 1: the module's typical small usage (x: 2x4x16x16) ----------
    x, W, b, b_i, sg, sb = make_inputs(k1, 2, 4, 8, 16, 16)
    ref = reference(x, W, b, b_i, sg, sb)

    # (a) f32-operand path, one image per batch block (TPU default matmul
    #     precision -> loose-ish tolerance is expected).
    out_f32 = adafm_svd_forward(x, W, b, b_i, sg, sb,
                                compute_dtype=jnp.float32, block_n=1)
    out_f32 = jax.block_until_ready(out_f32)
    assert out_f32.shape == ref.shape
    assert jnp.allclose(out_f32, ref, atol=2e-2, rtol=1e-2), "f32 path mismatch"

    # (b) default fast path: bf16 MXU operands with f32 accumulation.
    out_bf16 = adafm_svd_forward(x, W, b, b_i, sg, sb)
    out_bf16 = jax.block_until_ready(out_bf16)
    assert jnp.allclose(out_bf16, ref, atol=7e-2, rtol=5e-2), "bf16 path mismatch"

    # (c) bounded-VMEM path: force the 9-accumulating-matmul variant.
    out_acc = adafm_svd_forward(x, W, b, b_i, sg, sb, cols_budget_bytes=0)
    out_acc = jax.block_until_ready(out_acc)
    assert jnp.allclose(out_acc, ref, atol=7e-2, rtol=5e-2), "accumulate path mismatch"

    # --- Config 2: multiple Cout tiles -> exercises the hoisted padded-input
    #     reuse across the inner ("arbitrary") Cout sweep. --------------------
    x2, W2, b2, b_i2, sg2, sb2 = make_inputs(k2, 2, 8, 256, 8, 8)
    ref2 = reference(x2, W2, b2, b_i2, sg2, sb2)
    out2 = adafm_svd_forward(x2, W2, b2, b_i2, sg2, sb2, block_cout=128)
    out2 = jax.block_until_ready(out2)
    assert jnp.allclose(out2, ref2, atol=1e-1, rtol=5e-2), "multi Cout-tile mismatch"

    # TODO(synk): task_id >= 0 branch and update_global (Python-list lookup of
    # per-task gamma/beta/bias) are host-side bookkeeping, not kernel work.
    print("KERNEL_OK")
</pallas_src>

<mosaic_0001>
module attributes {stable_mosaic.version = 11 : i64} {
  func.func @_adafm_conv_kernel(%arg0: i32, %arg1: i32, %arg2: memref<1x16x16x4xf32, #tpu.memory_space<vmem>>, %arg3: memref<3x3x4x128xf32, #tpu.memory_space<vmem>>, %arg4: memref<4x128xf32, #tpu.memory_space<vmem>>, %arg5: memref<4x128xf32, #tpu.memory_space<vmem>>, %arg6: memref<1x128xf32, #tpu.memory_space<vmem>>, %arg7: memref<1x256x128xf32, #tpu.memory_space<vmem>>, %arg8: memref<1x18x18x4xf32, #tpu.memory_space<vmem>>) attributes {dimension_semantics = [#tpu.dimension_semantics<parallel>, #tpu.dimension_semantics<arbitrary>], iteration_bounds = array<i64: 2, 1>, scalar_prefetch = 0 : i64, scratch_operands = 1 : i64, tpu.core_type = #tpu.core_type<tc>, window_params = [{transform_indices = @transform_0, window_bounds = array<i64: 1, 16, 16, 4>}, {transform_indices = @transform_1, window_bounds = array<i64: 3, 3, 4, 128>}, {transform_indices = @transform_2, window_bounds = array<i64: 4, 128>}, {transform_indices = @transform_3, window_bounds = array<i64: 4, 128>}, {transform_indices = @transform_4, window_bounds = array<i64: 1, 128>}, {transform_indices = @transform_5, window_bounds = array<i64: 1, 256, 128>}]} {
    %c0_i32 = arith.constant 0 : i32
    %0 = arith.cmpi eq, %arg1, %c0_i32 : i32
    %1 = arith.extui %0 : i1 to i32
    %c0_i32_0 = arith.constant 0 : i32
    %2 = arith.cmpi ne, %1, %c0_i32_0 : i32
    scf.if %2 {
      %cst_47 = arith.constant 0.000000e+00 : f32
      %30 = vector.broadcast %cst_47 : f32 to vector<1x1x18x4xf32>
      %cst_48 = arith.constant 0.000000e+00 : f32
      %31 = vector.broadcast %cst_48 : f32 to vector<1x18x1x4xf32>
      %c0_49 = arith.constant 0 : index
      %c0_50 = arith.constant 0 : index
      %c0_51 = arith.constant 0 : index
      %c0_52 = arith.constant 0 : index
      %32 = vector.load %arg8[%c0_49, %c0_50, %c0_51, %c0_52] : memref<1x18x18x4xf32, #tpu.memory_space<vmem>>, vector<1x1x18x4xf32>
      tpu.vector_store %arg8[%c0_49, %c0_50, %c0_51, %c0_52], %30 {strides = array<i32>} : memref<1x18x18x4xf32, #tpu.memory_space<vmem>>, vector<1x1x18x4xf32>,
      %c0_53 = arith.constant 0 : index
      %c17 = arith.constant 17 : index
      %c0_54 = arith.constant 0 : index
      %c0_55 = arith.constant 0 : index
      %33 = vector.load %arg8[%c0_53, %c17, %c0_54, %c0_55] : memref<1x18x18x4xf32, #tpu.memory_space<vmem>>, vector<1x1x18x4xf32>
      tpu.vector_store %arg8[%c0_53, %c17, %c0_54, %c0_55], %30 {strides = array<i32>} : memref<1x18x18x4xf32, #tpu.memory_space<vmem>>, vector<1x1x18x4xf32>,
      %c0_56 = arith.constant 0 : index
      %c0_57 = arith.constant 0 : index
      %c0_58 = arith.constant 0 : index
      %c0_59 = arith.constant 0 : index
      %34 = vector.load %arg8[%c0_56, %c0_57, %c0_58, %c0_59] : memref<1x18x18x4xf32, #tpu.memory_space<vmem>>, vector<1x18x1x4xf32>
      tpu.vector_store %arg8[%c0_56, %c0_57, %c0_58, %c0_59], %31 {strides = array<i32>} : memref<1x18x18x4xf32, #tpu.memory_space<vmem>>, vector<1x18x1x4xf32>,
      %c0_60 = arith.constant 0 : index
      %c0_61 = arith.constant 0 : index
      %c17_62 = arith.constant 17 : index
      %c0_63 = arith.constant 0 : index
      %35 = vector.load %arg8[%c0_60, %c0_61, %c17_62, %c0_63] : memref<1x18x18x4xf32, #tpu.memory_space<vmem>>, vector<1x18x1x4xf32>
      tpu.vector_store %arg8[%c0_60, %c0_61, %c17_62, %c0_63], %31 {strides = array<i32>} : memref<1x18x18x4xf32, #tpu.memory_space<vmem>>, vector<1x18x1x4xf32>,
      %c0_64 = arith.constant 0 : index
      %c0_65 = arith.constant 0 : index
      %c0_66 = arith.constant 0 : index
      %c0_67 = arith.constant 0 : index
      %36 = vector.load %arg2[%c0_64, %c0_65, %c0_66, %c0_67] : memref<1x16x16x4xf32, #tpu.memory_space<vmem>>, vector<1x16x16x4xf32>
      %c0_68 = arith.constant 0 : index
      %c1_69 = arith.constant 1 : index
      %c1_70 = arith.constant 1 : index
      %c0_71 = arith.constant 0 : index
      %37 = vector.load %arg8[%c0_68, %c1_69, %c1_70, %c0_71] : memref<1x18x18x4xf32, #tpu.memory_space<vmem>>, vector<1x16x16x4xf32>
      tpu.vector_store %arg8[%c0_68, %c1_69, %c1_70, %c0_71], %36 {strides = array<i32>} : memref<1x18x18x4xf32, #tpu.memory_space<vmem>>, vector<1x16x16x4xf32>,
    } else {
    }
    %c0 = arith.constant 0 : index
    %c0_1 = arith.constant 0 : index
    %3 = vector.load %arg4[%c0, %c0_1] : memref<4x128xf32, #tpu.memory_space<vmem>>, vector<4x128xf32>
    %4 = vector.shape_cast %3 : vector<4x128xf32> to vector<1x1x4x128xf32>
    %c0_2 = arith.constant 0 : index
    %c0_3 = arith.constant 0 : index
    %c0_4 = arith.constant 0 : index
    %c0_5 = arith.constant 0 : index
    %5 = vector.load %arg3[%c0_2, %c0_3, %c0_4, %c0_5] : memref<3x3x4x128xf32, #tpu.memory_space<vmem>>, vector<3x3x4x128xf32>
    %6 = vector.broadcast %4 : vector<1x1x4x128xf32> to vector<3x3x4x128xf32>
    %7 = arith.mulf %6, %5 : vector<3x3x4x128xf32>
    %c0_6 = arith.constant 0 : index
    %c0_7 = arith.constant 0 : index
    %8 = vector.load %arg5[%c0_6, %c0_7] : memref<4x128xf32, #tpu.memory_space<vmem>>, vector<4x128xf32>
    %9 = vector.shape_cast %8 : vector<4x128xf32> to vector<1x1x4x128xf32>
    %10 = vector.broadcast %9 : vector<1x1x4x128xf32> to vector<3x3x4x128xf32>
    %11 = arith.addf %7, %10 : vector<3x3x4x128xf32>
    %c0_8 = arith.constant 0 : index
    %c0_9 = arith.constant 0 : index
    %c0_10 = arith.constant 0 : index
    %c0_11 = arith.constant 0 : index
    %12 = vector.load %arg8[%c0_8, %c0_9, %c0_10, %c0_11] : memref<1x18x18x4xf32, #tpu.memory_space<vmem>>, vector<1x16x16x4xf32>
    %c0_12 = arith.constant 0 : index
    %c0_13 = arith.constant 0 : index
    %c1 = arith.constant 1 : index
    %c0_14 = arith.constant 0 : index
    %13 = vector.load %arg8[%c0_12, %c0_13, %c1, %c0_14] : memref<1x18x18x4xf32, #tpu.memory_space<vmem>>, vector<1x16x16x4xf32>
    %c0_15 = arith.constant 0 : index
    %c0_16 = arith.constant 0 : index
    %c2 = arith.constant 2 : index
    %c0_17 = arith.constant 0 : index
    %14 = vector.load %arg8[%c0_15, %c0_16, %c2, %c0_17] : memref<1x18x18x4xf32, #tpu.memory_space<vmem>>, vector<1x16x16x4xf32>
    %c0_18 = arith.constant 0 : index
    %c1_19 = arith.constant 1 : index
    %c0_20 = arith.constant 0 : index
    %c0_21 = arith.constant 0 : index
    %15 = vector.load %arg8[%c0_18, %c1_19, %c0_20, %c0_21] : memref<1x18x18x4xf32, #tpu.memory_space<vmem>>, vector<1x16x16x4xf32>
    %c0_22 = arith.constant 0 : index
    %c1_23 = arith.constant 1 : index
    %c1_24 = arith.constant 1 : index
    %c0_25 = arith.constant 0 : index
    %16 = vector.load %arg8[%c0_22, %c1_23, %c1_24, %c0_25] : memref<1x18x18x4xf32, #tpu.memory_space<vmem>>, vector<1x16x16x4xf32>
    %c0_26 = arith.constant 0 : index
    %c1_27 = arith.constant 1 : index
    %c2_28 = arith.constant 2 : index
    %c0_29 = arith.constant 0 : index
    %17 = vector.load %arg8[%c0_26, %c1_27, %c2_28, %c0_29] : memref<1x18x18x4xf32, #tpu.memory_space<vmem>>, vector<1x16x16x4xf32>
    %c0_30 = arith.constant 0 : index
    %c2_31 = arith.constant 2 : index
    %c0_32 = arith.constant 0 : index
    %c0_33 = arith.constant 0 : index
    %18 = vector.load %arg8[%c0_30, %c2_31, %c0_32, %c0_33] : memref<1x18x18x4xf32, #tpu.memory_space<vmem>>, vector<1x16x16x4xf32>
    %c0_34 = arith.constant 0 : index
    %c2_35 = arith.constant 2 : index
    %c1_36 = arith.constant 1 : index
    %c0_37 = arith.constant 0 : index
    %19 = vector.load %arg8[%c0_34, %c2_35, %c1_36, %c0_37] : memref<1x18x18x4xf32, #tpu.memory_space<vmem>>, vector<1x16x16x4xf32>
    %c0_38 = arith.constant 0 : index
    %c2_39 = arith.constant 2 : index
    %c2_40 = arith.constant 2 : index
    %c0_41 = arith.constant 0 : index
    %20 = vector.load %arg8[%c0_38, %c2_39, %c2_40, %c0_41] : memref<1x18x18x4xf32, #tpu.memory_space<vmem>>, vector<1x16x16x4xf32>
    %21 = tpu.concatenate %12, %13, %14, %15, %16, %17, %18, %19, %20 in 3 : vector<1x16x16x4xf32>, vector<1x16x16x4xf32>, vector<1x16x16x4xf32>, vector<1x16x16x4xf32>, vector<1x16x16x4xf32>, vector<1x16x16x4xf32>, vector<1x16x16x4xf32>, vector<1x16x16x4xf32>, vector<1x16x16x4xf32> -> vector<1x16x16x36xf32>
    %22 = vector.shape_cast %21 : vector<1x16x16x36xf32> to vector<256x36xf32>
    %23 = vector.shape_cast %11 : vector<3x3x4x128xf32> to vector<36x128xf32>
    %cst = arith.constant dense<0.000000e+00> : vector<256x128xf32>
    %24 = tpu.matmul %22, %23, %cst {dimension_numbers = #tpu.dot_dimension_numbers<[1], [0], [0], [1], [0, 0, 1, 1], [], []>} : vector<256x36xf32>, vector<36x128xf32>, vector<256x128xf32> -> vector<256x128xf32>
    %c0_42 = arith.constant 0 : index
    %c0_43 = arith.constant 0 : index
    %25 = vector.load %arg6[%c0_42, %c0_43] : memref<1x128xf32, #tpu.memory_space<vmem>>, vector<1x128xf32>
    %26 = vector.broadcast %25 : vector<1x128xf32> to vector<256x128xf32>
    %27 = arith.addf %24, %26 : vector<256x128xf32>
    %28 = vector.shape_cast %27 : vector<256x128xf32> to vector<1x256x128xf32>
    %c0_44 = arith.constant 0 : index
    %c0_45 = arith.constant 0 : index
    %c0_46 = arith.constant 0 : index
    %29 = vector.load %arg7[%c0_44, %c0_45, %c0_46] : memref<1x256x128xf32, #tpu.memory_space<vmem>>, vector<1x256x128xf32>
    tpu.vector_store %arg7[%c0_44, %c0_45, %c0_46], %28 {strides = array<i32>} : memref<1x256x128xf32, #tpu.memory_space<vmem>>, vector<1x256x128xf32>,
    return
  }
  func.func @transform_0(%arg0: i32, %arg1: i32) -> (i32, i32, i32, i32) {
    %c0_i32 = arith.constant 0 : i32
    %c0_i32_0 = arith.constant 0 : i32
    %c0_i32_1 = arith.constant 0 : i32
    %c0_i32_2 = arith.constant 0 : i32
    return %arg0, %c0_i32, %c0_i32_0, %c0_i32_1 : i32, i32, i32, i32
  }
  func.func @transform_1(%arg0: i32, %arg1: i32) -> (i32, i32, i32, i32) {
    %c0_i32 = arith.constant 0 : i32
    %c0_i32_0 = arith.constant 0 : i32
    %c0_i32_1 = arith.constant 0 : i32
    %c0_i32_2 = arith.constant 0 : i32
    return %c0_i32, %c0_i32_0, %c0_i32_1, %arg1 : i32, i32, i32, i32
  }
  func.func @transform_2(%arg0: i32, %arg1: i32) -> (i32, i32) {
    %c0_i32 = arith.constant 0 : i32
    %c0_i32_0 = arith.constant 0 : i32
    return %c0_i32, %arg1 : i32, i32
  }
  func.func @transform_3(%arg0: i32, %arg1: i32) -> (i32, i32) {
    %c0_i32 = arith.constant 0 : i32
    %c0_i32_0 = arith.constant 0 : i32
    return %c0_i32, %arg1 : i32, i32
  }
  func.func @transform_4(%arg0: i32, %arg1: i32) -> (i32, i32) {
    %c0_i32 = arith.constant 0 : i32
    %c0_i32_0 = arith.constant 0 : i32
    return %c0_i32, %arg1 : i32, i32
  }
  func.func @transform_5(%arg0: i32, %arg1: i32) -> (i32, i32, i32) {
    %c0_i32 = arith.constant 0 : i32
    %c0_i32_0 = arith.constant 0 : i32
    return %arg0, %c0_i32, %arg1 : i32, i32, i32
  }
}

</mosaic_0001>

<bundles_post_ra>
// kernel: tpu_custom_call.1
= control target key start
LH: loop header
LB: loop body
LE: loop exit
PB: predicated region body
PF: predicated region fallthrough
CT: control target
= control target key end

     0   :  { %10 = vsyncpa [#allocation4], 0  ;;  %s4549_s0 = inlined_call_operand.vmem [shape: f32[2,16,16,4], index: 0, kind: input, shape index: {}]   ;;  %s4550_s1 = inlined_call_operand.vmem [shape: f32[3,3,4,128], index: 1, kind: input, shape index: {}]   ;;  %s4551_s2 = inlined_call_operand.vmem [shape: f32[4,128], index: 2, kind: input, shape index: {}]   ;;  %s4552_s3 = inlined_call_operand.vmem [shape: f32[4,128], index: 3, kind: input, shape index: {}]   ;;  %s4553_s4 = inlined_call_operand.vmem [shape: f32[1,128], index: 4, kind: input, shape index: {}]   ;;  %s4554_s5 = inlined_call_operand.hbm [shape: f32[2,256,128], index: 5, kind: output, shape index: {}]  }
   0x1   :  { %12 = vsyncpa [#allocation4 + $0x1], 0  ;;  %s2714_s18 = smov 0   ;;  %s2716_s19 = smov 0  }
   0x2   :  { %s2718_s20 = smov 0   ;;  %s2720_s21 = smov 0  }
   0x3   :  { %s2722_s22 = smov 0   ;;  %s2724_s23 = smov 0  }
   0x4 LB: > { %s2453_s24 = sadd.s32 4294967295, %s2672_s23   ;;  %s2454_s25 = sadd.s32 4294967294, %s2672_s23   ;;  %s2672_s23 = sphi %s2724_s23, %s18_s23   ;;  %s2668_s22 = sphi %s2722_s22, %s4836_s22   ;;  %s2664_s21 = sphi %s2720_s21, %s4835_s21   ;;  %s2660_s20 = sphi %s2718_s20, %s4834_s20   ;;  %s2656_s19 = sphi %s2716_s19, %s4833_s19   ;;  %s2652_s18 = sphi %s2714_s18, %s4832_s18  }
   0x5   : > { %s30_s26 = sadd.s32 1, %s2668_s22  ;;  %s169_s27 = sadd.s32 1, %s2660_s20 }
   0x6   : > { %p32_p0 = scmp.ge.s32.totalorder %s30_s26, 2  ;;  %p179_p1 = scmp.ne.s32.totalorder %s2660_s20, %s2656_s19 }
   0x7   : > { %p180_p2 = scmp.eq.s32.totalorder %s2453_s24, 1  ;;  %p185_p3 = scmp.ne.s32.totalorder %s2656_s19, %s2652_s18 }
   0x8   : > { %s4838_s26 = smov (%p32_p0, %s30_s26), 0  ;;  %p186_p5 = scmp.eq.s32.totalorder %s2454_s25, 1 }
   0x9   : > { %p2754_p4 = por %p180_p2, %p179_p1  ;;  %s164_s29 = ssub.s32 %s2668_s22, %s4838_s26 }
   0xa   : > { %p2461_p6 = scmp.ge.s32.totalorder %s2672_s23, 1  ;;  %p167_p7 = scmp.eq.s32.totalorder %s164_s29, 0 }
   0xb   : > { %p2761_p8 = por %p186_p5, %p185_p3  ;;  %p239_p9 = scmp.lt.s32.totalorder %s2672_s23, 3 }
   0xc   : > { %s2767_s6 = scalar_select %p167_p7, %s2660_s20, %s169_s27  }
   0xd   : > { %p240_p10 = pnand %p2461_p6, %p239_p9 }
   0xf   : > { %243 = sbr.rel (%p240_p10) target bundleno = 958 (0x3be), region = 40 }
  0x14   : > { %vm306_vm0 = vcmask 31744   ;;  %p282_p11 = scmp.lt.s32.totalorder %s2664_s21, 1  ;;  %v2674_v0 = vmov 0.0   ;;  %vm309_vm1 = vcmask 25600   ;;  %s2675_s12 = smov 4   ;;  %vm315_vm2 = vcmask 24576  }
  0x15   : > { %307 = vst.msk [vmem:[#allocation2] sm:$0xff] %vm306_vm0, %v2674_v0  ;;  %s2676_s13 = smov 8   ;;  %s2677_s14 = smov 12   ;;  %vm1793_vm3 = vcmask 64512   ;;  %vm1826_vm4 = vcmask 97280   ;;  %vm1859_vm5 = vcmask 130048  }
  0x16   : > { %308 = vst.msk [vmem:[#allocation2 + $0x8] sm:$0xff] %vm306_vm0, %v2674_v0  ;;  %s283_s7 = scalar_select %p282_p11, %s2664_s21, 1  ;;  %vm1892_vm6 = vcmask 162816   ;;  %vm1925_vm7 = vcmask 195584   ;;  %vm2159_vm8 = vcmask 1043456   ;;  %vm1958_vm9 = vcmask 228352  }
  0x17   : > { %312 = vst.msk [vmem:[#allocation2 + $0x198] sm:$0xff] %vm306_vm0, %v2674_v0  ;;  %s2678_s15 = smov 16   ;;  %s2679_s16 = smov 20   ;;  %vm1991_vm10 = vcmask 261120   ;;  %vm2062_vm11 = vcmask 293888  }
  0x18   : > { %313 = vst.msk [vmem:[#allocation2 + $0x1a0] sm:$0xff] %vm306_vm0, %v2674_v0  ;;  %s2503_s8 = sshll.u32 %s283_s7, 8  ;;  %s2680_s17 = smov 24  }
  0x19   : > { %s2782_s11 = scalar_lea.vmem %s4549_s0, %s2503_s8  ;;  %310 = vst.msk [vmem:[#allocation2 + $0x10] sm:$0x3] %vm309_vm1, %v2674_v0  ;;  %s2681_s24 = smov 28  }
  0x1a   : > { %v354_v1 = vld [vmem:[%s2782_s11 + $0x10] sm:$0xff]  ;;  %v352_v2 = vld [vmem:[%s2782_s11] sm:$0xff]  ;;  %314 = vst.msk [vmem:[#allocation2 + $0x1a8] sm:$0x3] %vm309_vm1, %v2674_v0  ;;  %v355_v3 = vld [vmem:[%s2782_s11 + $0x18] sm:$0xff]  ;;  %s2682_s25 = smov 32  }
  0x1b   : > { %387 = vst.msk [vmem:[#allocation2 + $0x31] sm:$0xff] %vm306_vm0, %v354_v1  ;;  %v353_v4 = vld [vmem:[%s2782_s11 + $0x8] sm:$0xff]  ;;  %v356_v5 = vld [vmem:[%s2782_s11 + $0x20] sm:$0xff]  ;;  %v358_v7 = vld [vmem:[%s2782_s11 + $0x30] sm:$0xff]  ;;  %s2504_s7 = sshll.u32 %s2664_s21, 8 }
  0x1c   : > { %385 = vst.msk [vmem:[#allocation2 + $0x19] sm:$0xff] %vm306_vm0, %v352_v2  ;;  %v357_v8 = vld [vmem:[%s2782_s11 + $0x28] sm:$0xff]  ;;  %v359_v9 = vld [vmem:[%s2782_s11 + $0x38] sm:$0xff]  ;;  %v360_v11 = vld [vmem:[%s2782_s11 + $0x40] sm:$0xff]  ;;  %s2320_s10 = scalar_lea.hbm %s4554_s5, %s2504_s7 }
  0x1d   : > { %v478_v6 = vld [vmem:[#allocation2 + $0x1] sm:$0xff]  ;;  %388 = vst.msk [vmem:[#allocation2 + $0x39] sm:$0xff] %vm306_vm0, %v355_v3  ;;  %v364_v16 = vld [vmem:[%s2782_s11 + $0x60] sm:$0xff]  ;;  %v363_v17 = vld [vmem:[%s2782_s11 + $0x58] sm:$0xff] }
  0x1e   : > { %768 = vrot.lane.b32.xlu0 %v478_v6, %s2675_s12  ;;  %386 = vst.msk [vmem:[#allocation2 + $0x21] sm:$0xff] %vm306_vm0, %v353_v4  ;;  %v361_v10 = vld [vmem:[%s2782_s11 + $0x48] sm:$0xff]  ;;  %v362_v13 = vld [vmem:[%s2782_s11 + $0x50] sm:$0xff]  ;;  %v367_v19 = vld [vmem:[%s2782_s11 + $0x78] sm:$0xff] }
  0x1f   : > { %389 = vst.msk [vmem:[#allocation2 + $0x49] sm:$0xff] %vm306_vm0, %v356_v5  ;;  %v365_v18 = vld [vmem:[%s2782_s11 + $0x68] sm:$0xff]  ;;  %v366_v20 = vld [vmem:[%s2782_s11 + $0x70] sm:$0xff]  ;;  %v368_v22 = vld [vmem:[%s2782_s11 + $0x80] sm:$0xff] }
  0x20   : > { %391 = vst.msk [vmem:[#allocation2 + $0x61] sm:$0xff] %vm306_vm0, %v358_v7  ;;  %v479_v15 = vld [vmem:[#allocation2 + $0x9] sm:$0xff]  ;;  %v369_v26 = vld [vmem:[%s2782_s11 + $0x88] sm:$0xff]  ;;  %v372_v32 = vld [vmem:[%s2782_s11 + $0xa0] sm:$0xff] }
  0x21   : > { %390 = vst.msk [vmem:[#allocation2 + $0x51] sm:$0xff] %vm306_vm0, %v357_v8  ;;  %v370_v25 = vld [vmem:[%s2782_s11 + $0x90] sm:$0xff]  ;;  %v371_v27 = vld [vmem:[%s2782_s11 + $0x98] sm:$0xff]  ;;  %v373_v31 = vld [vmem:[%s2782_s11 + $0xa8] sm:$0xff] }
  0x22   : > { %v2804_v12 = vld [vmem:[#allocation2 + $0x31] sm:$0xff]  ;;  %392 = vst.msk [vmem:[#allocation2 + $0x69] sm:$0xff] %vm306_vm0, %v359_v9  ;;  %v374_v33 = vld [vmem:[%s2782_s11 + $0xb0] sm:$0xff]  ;;  %v377_v39 = vld [vmem:[%s2782_s11 + $0xc8] sm:$0xff] }
  0x23   : > { %776 = vrot.lane.b32.xlu2 %v2804_v12, %s2675_s12  ;;  %v2810_v14 = vld [vmem:[#allocation2 + $0x19] sm:$0xff]  ;;  %394 = vst.msk [vmem:[#allocation2 + $0x81] sm:$0xff] %vm306_vm0, %v361_v10  ;;  %v375_v38 = vld [vmem:[%s2782_s11 + $0xb8] sm:$0xff]  ;;  %v378_v44 = vld [vmem:[%s2782_s11 + $0xd0] sm:$0xff] }
  0x24   : > { %772 = vrot.lane.b32.xlu1 %v2810_v14, %s2675_s12  ;;  %393 = vst.msk [vmem:[#allocation2 + $0x79] sm:$0xff] %vm306_vm0, %v360_v11  ;;  %v2825_v21 = vld [vmem:[#allocation2 + $0x39] sm:$0xff]  ;;  %v379_v43 = vld [vmem:[%s2782_s11 + $0xd8] sm:$0xff]  ;;  %v510_v62 = vld [vmem:[#allocation2 + $0x2] sm:$0xff] }
  0x25   : > { %395 = vst.msk [vmem:[#allocation2 + $0x91] sm:$0xff] %vm306_vm0, %v362_v13  ;;  %v2829_v23 = vld [vmem:[#allocation2 + $0x21] sm:$0xff]  ;;  %v376_v37 = vld [vmem:[%s2782_s11 + $0xc0] sm:$0xff] }
  0x26   : > { %770 = vrot.lane.b32.xlu0 %v479_v15, %s2675_s12  ;;  %397 = vst.msk [vmem:[#allocation2 + $0xa9] sm:$0xff] %vm306_vm0, %v364_v16  ;;  %v2835_v24 = vld [vmem:[#allocation2 + $0x49] sm:$0xff]  ;;  %v380_v45 = vld [vmem:[%s2782_s11 + $0xe0] sm:$0xff]  ;;  %v381_v49 = vld [vmem:[%s2782_s11 + $0xe8] sm:$0xff] }
  0x27   : > { %396 = vst.msk [vmem:[#allocation2 + $0x99] sm:$0xff] %vm306_vm0, %v363_v17  ;;  %v2848_v28 = vld [vmem:[#allocation2 + $0x61] sm:$0xff]  ;;  %v3048_v4 = vld [vmem:[#allocation2 + $0x32] sm:$0xff] }
  0x28   : > { %398 = vst.msk [vmem:[#allocation2 + $0xb1] sm:$0xff] %vm306_vm0, %v365_v18  ;;  %v2850_v29 = vld [vmem:[#allocation2 + $0x51] sm:$0xff]  ;;  %v3044_v3 = vld [vmem:[#allocation2 + $0x1a] sm:$0xff] }
  0x29   : > { %400 = vst.msk [vmem:[#allocation2 + $0xc9] sm:$0xff] %vm306_vm0, %v367_v19  ;;  %v2854_v30 = vld [vmem:[#allocation2 + $0x69] sm:$0xff] }
  0x2a   : > { %399 = vst.msk [vmem:[#allocation2 + $0xc1] sm:$0xff] %vm306_vm0, %v366_v20  ;;  %v2866_v34 = vld [vmem:[#allocation2 + $0x81] sm:$0xff]  ;;  %v3056_v5 = vld [vmem:[#allocation2 + $0x4a] sm:$0xff] }
  0x2b   : > { %778 = vrot.lane.b32.xlu2 %v2825_v21, %s2675_s12  ;;  %401 = vst.msk [vmem:[#allocation2 + $0xd9] sm:$0xff] %vm306_vm0, %v368_v22  ;;  %v2868_v35 = vld [vmem:[#allocation2 + $0x79] sm:$0xff]  ;;  %v3072_v10 = vld [vmem:[#allocation2 + $0x62] sm:$0xff] }
  0x2c   : > { %774 = vrot.lane.b32.xlu1 %v2829_v23, %s2675_s12  ;;  %403 = vst.msk [vmem:[#allocation2 + $0xf1] sm:$0xff] %vm306_vm0, %v370_v25  ;;  %v2872_v36 = vld [vmem:[#allocation2 + $0x91] sm:$0xff]  ;;  %v3076_v11 = vld [vmem:[#allocation2 + $0x7a] sm:$0xff] }
  0x2d   : > { %402 = vst.msk [vmem:[#allocation2 + $0xe1] sm:$0xff] %vm306_vm0, %v369_v26  ;;  %v2884_v40 = vld [vmem:[#allocation2 + $0xa9] sm:$0xff] }
  0x2e   : > { %780 = vrot.lane.b32.xlu0 %v2835_v24, %s2675_s12  ;;  %404 = vst.msk [vmem:[#allocation2 + $0xf9] sm:$0xff] %vm306_vm0, %v371_v27  ;;  %v2886_v41 = vld [vmem:[#allocation2 + $0x99] sm:$0xff] }
  0x2f   : > { %406 = vst.msk [vmem:[#allocation2 + $0x111] sm:$0xff] %vm306_vm0, %v373_v31  ;;  %v2890_v42 = vld [vmem:[#allocation2 + $0xb1] sm:$0xff] }
  0x30   : > { %405 = vst.msk [vmem:[#allocation2 + $0x109] sm:$0xff] %vm306_vm0, %v372_v32  ;;  %v2902_v46 = vld [vmem:[#allocation2 + $0xc9] sm:$0xff]  ;;  %v3086_v16 = vld [vmem:[#allocation2 + $0x92] sm:$0xff] }
  0x31   : > { %407 = vst.msk [vmem:[#allocation2 + $0x121] sm:$0xff] %vm306_vm0, %v374_v33  ;;  %v2904_v47 = vld [vmem:[#allocation2 + $0xc1] sm:$0xff]  ;;  %v3106_v26 = vld [vmem:[#allocation2 + $0xaa] sm:$0xff] }
  0x32   : > { %409 = vst.msk [vmem:[#allocation2 + $0x139] sm:$0xff] %vm306_vm0, %v376_v37  ;;  %v2908_v48 = vld [vmem:[#allocation2 + $0xd9] sm:$0xff]  ;;  %v3110_v27 = vld [vmem:[#allocation2 + $0xc2] sm:$0xff] }
  0x33   : > { %784 = vrot.lane.b32.xlu2 %v2848_v28, %s2675_s12  ;;  %408 = vst.msk [vmem:[#allocation2 + $0x129] sm:$0xff] %vm306_vm0, %v375_v38  ;;  %v2920_v50 = vld [vmem:[#allocation2 + $0xf1] sm:$0xff] }
  0x34   : > { %782 = vrot.lane.b32.xlu1 %v2850_v29, %s2675_s12  ;;  %410 = vst.msk [vmem:[#allocation2 + $0x141] sm:$0xff] %vm306_vm0, %v377_v39  ;;  %v2924_v51 = vld [vmem:[#allocation2 + $0xe1] sm:$0xff] }
  0x35   : > { %412 = vst.msk [vmem:[#allocation2 + $0x159] sm:$0xff] %vm306_vm0, %v379_v43  ;;  %v2932_v52 = vld [vmem:[#allocation2 + $0xf9] sm:$0xff] }
  0x36   : > { %786 = vrot.lane.b32.xlu0 %v2854_v30, %s2675_s12  ;;  %411 = vst.msk [vmem:[#allocation2 + $0x151] sm:$0xff] %vm306_vm0, %v378_v44  ;;  %v2948_v53 = vld [vmem:[#allocation2 + $0x111] sm:$0xff]  ;;  %v3122_v37 = vld [vmem:[#allocation2 + $0xda] sm:$0xff] }
  0x37   : > { %413 = vst.msk [vmem:[#allocation2 + $0x169] sm:$0xff] %vm306_vm0, %v380_v45  ;;  %v2952_v54 = vld [vmem:[#allocation2 + $0x109] sm:$0xff] }
  0x38   : > { %414 = vst.msk [vmem:[#allocation2 + $0x171] sm:$0xff] %vm306_vm0, %v381_v49  ;;  %v2960_v55 = vld [vmem:[#allocation2 + $0x121] sm:$0xff] }
  0x39   : > { %334 = vst.msk [vmem:[#allocation2 + $0x11] sm:$0x1] %vm315_vm2, %v2674_v0  ;;  %v2976_v56 = vld [vmem:[#allocation2 + $0x139] sm:$0xff] }
  0x3a   : > { %316 = vst.msk [vmem:[#allocation2] sm:$0x1] %vm315_vm2, %v2674_v0  ;;  %v2980_v57 = vld [vmem:[#allocation2 + $0x129] sm:$0xff] }
  0x3b   : > { %790 = vrot.lane.b32.xlu2 %v2866_v34, %s2675_s12  ;;  %317 = vst.msk [vmem:[#allocation2 + $0x18] sm:$0x1] %vm315_vm2, %v2674_v0  ;;  %v2988_v58 = vld [vmem:[#allocation2 + $0x141] sm:$0xff] }
  0x3c   : > { %788 = vrot.lane.b32.xlu1 %v2868_v35, %s2675_s12  ;;  %318 = vst.msk [vmem:[#allocation2 + $0x30] sm:$0x1] %vm315_vm2, %v2674_v0  ;;  %v3004_v59 = vld [vmem:[#allocation2 + $0x159] sm:$0xff] }
  0x3d   : > { %319 = vst.msk [vmem:[#allocation2 + $0x48] sm:$0x1] %vm315_vm2, %v2674_v0  ;;  %v3008_v60 = vld [vmem:[#allocation2 + $0x151] sm:$0xff] }
  0x3e   : > { %792 = vrot.lane.b32.xlu0 %v2872_v36, %s2675_s12  ;;  %320 = vst.msk [vmem:[#allocation2 + $0x60] sm:$0x1] %vm315_vm2, %v2674_v0  ;;  %v3016_v61 = vld [vmem:[#allocation2 + $0x169] sm:$0xff] }
  0x3f   : > { %321 = vst.msk [vmem:[#allocation2 + $0x78] sm:$0x1] %vm315_vm2, %v2674_v0  ;;  %v3034_v63 = vld [vmem:[#allocation2 + $0x171] sm:$0xff] }
  0x40   : > { %322 = vst.msk [vmem:[#allocation2 + $0x90] sm:$0x1] %vm315_vm2, %v2674_v0  ;;  %v511_v1 = vld [vmem:[#allocation2 + $0xa] sm:$0xff] }
  0x41   : > { %323 = vst.msk [vmem:[#allocation2 + $0xa8] sm:$0x1] %vm315_vm2, %v2674_v0 }
  0x42   : > { %324 = vst.msk [vmem:[#allocation2 + $0xc0] sm:$0x1] %vm315_vm2, %v2674_v0 }
  0x43   : > { %796 = vrot.lane.b32.xlu2 %v2884_v40, %s2675_s12  ;;  %325 = vst.msk [vmem:[#allocation2 + $0xd8] sm:$0x1] %vm315_vm2, %v2674_v0 }
  0x44   : > { %794 = vrot.lane.b32.xlu1 %v2886_v41, %s2675_s12  ;;  %326 = vst.msk [vmem:[#allocation2 + $0xf0] sm:$0x1] %vm315_vm2, %v2674_v0 }
  0x45   : > { %327 = vst.msk [vmem:[#allocation2 + $0x108] sm:$0x1] %vm315_vm2, %v2674_v0 }
  0x46   : > { %798 = vrot.lane.b32.xlu0 %v2890_v42, %s2675_s12  ;;  %328 = vst.msk [vmem:[#allocation2 + $0x120] sm:$0x1] %vm315_vm2, %v2674_v0 }
  0x47   : > { %329 = vst.msk [vmem:[#allocation2 + $0x138] sm:$0x1] %vm315_vm2, %v2674_v0 }
  0x48   : > { %330 = vst.msk [vmem:[#allocation2 + $0x150] sm:$0x1] %vm315_vm2, %v2674_v0 }
  0x49   : > { %331 = vst.msk [vmem:[#allocation2 + $0x168] sm:$0x1] %vm315_vm2, %v2674_v0 }
  0x4a   : > { %332 = vst.msk [vmem:[#allocation2 + $0x180] sm:$0x1] %vm315_vm2, %v2674_v0 }
  0x4b   : > { %802 = vrot.lane.b32.xlu2 %v2902_v46, %s2675_s12  ;;  %333 = vst.msk [vmem:[#allocation2 + $0x198] sm:$0x1] %vm315_vm2, %v2674_v0 }
  0x4c   : > { %800 = vrot.lane.b32.xlu1 %v2904_v47, %s2675_s12  ;;  %335 = vst.msk [vmem:[#allocation2 + $0x29] sm:$0x1] %vm315_vm2, %v2674_v0 }
  0x4d   : > { %336 = vst.msk [vmem:[#allocation2 + $0x41] sm:$0x1] %vm315_vm2, %v2674_v0 }
  0x4e   : > { %804 = vrot.lane.b32.xlu0 %v2908_v48, %s2675_s12  ;;  %337 = vst.msk [vmem:[#allocation2 + $0x59] sm:$0x1] %vm315_vm2, %v2674_v0 }
  0x4f   : > { %338 = vst.msk [vmem:[#allocation2 + $0x71] sm:$0x1] %vm315_vm2, %v2674_v0 }
  0x50   : > { %339 = vst.msk [vmem:[#allocation2 + $0x89] sm:$0x1] %vm315_vm2, %v2674_v0 }
  0x51   : > { %340 = vst.msk [vmem:[#allocation2 + $0xa1] sm:$0x1] %vm315_vm2, %v2674_v0 }
  0x52   : > { %341 = vst.msk [vmem:[#allocation2 + $0xb9] sm:$0x1] %vm315_vm2, %v2674_v0 }
  0x53   : > { %808 = vrot.lane.b32.xlu2 %v2920_v50, %s2675_s12  ;;  %342 = vst.msk [vmem:[#allocation2 + $0xd1] sm:$0x1] %vm315_vm2, %v2674_v0  ;;  %v3042_v2 = vld [vmem:[#allocation2 + $0x22] sm:$0xff] }
  0x54   : > { %806 = vrot.lane.b32.xlu1 %v2924_v51, %s2675_s12  ;;  %343 = vst.msk [vmem:[#allocation2 + $0xe9] sm:$0x1] %vm315_vm2, %v2674_v0  ;;  %v3058_v6 = vld [vmem:[#allocation2 + $0x3a] sm:$0xff] }
  0x55   : > { %344 = vst.msk [vmem:[#allocation2 + $0x101] sm:$0x1] %vm315_vm2, %v2674_v0  ;;  %v3062_v7 = vld [vmem:[#allocation2 + $0x52] sm:$0xff] }
  0x56   : > { %810 = vrot.lane.b32.xlu0 %v2932_v52, %s2675_s12  ;;  %345 = vst.msk [vmem:[#allocation2 + $0x119] sm:$0x1] %vm315_vm2, %v2674_v0  ;;  %v3070_v9 = vld [vmem:[#allocation2 + $0x6a] sm:$0xff] }
  0x57   : > { %346 = vst.msk [vmem:[#allocation2 + $0x131] sm:$0x1] %vm315_vm2, %v2674_v0  ;;  %v3088_v17 = vld [vmem:[#allocation2 + $0x82] sm:$0xff] }
  0x58   : > { %347 = vst.msk [vmem:[#allocation2 + $0x149] sm:$0x1] %vm315_vm2, %v2674_v0  ;;  %v3092_v18 = vld [vmem:[#allocation2 + $0x9a] sm:$0xff] }
  0x59   : > { %348 = vst.msk [vmem:[#allocation2 + $0x161] sm:$0x1] %vm315_vm2, %v2674_v0  ;;  %v3104_v25 = vld [vmem:[#allocation2 + $0xb2] sm:$0xff] }
  0x5a   : > { %349 = vst.msk [vmem:[#allocation2 + $0x179] sm:$0x1] %vm315_vm2, %v2674_v0  ;;  %v3124_v38 = vld [vmem:[#allocation2 + $0xca] sm:$0xff] }
  0x5b   : > { %814 = vrot.lane.b32.xlu2 %v2948_v53, %s2675_s12  ;;  %350 = vst.msk [vmem:[#allocation2 + $0x191] sm:$0x1] %vm315_vm2, %v2674_v0  ;;  %v3128_v39 = vld [vmem:[#allocation2 + $0xe2] sm:$0xff] }
  0x5c   : > { %812 = vrot.lane.b32.xlu1 %v2952_v54, %s2675_s12  ;;  %351 = vst.msk [vmem:[#allocation2 + $0x1a9] sm:$0x1] %vm315_vm2, %v2674_v0  ;;  %v3140_v49 = vld [vmem:[#allocation2 + $0xfa] sm:$0xff] }
  0x5e   : > { %816 = vrot.lane.b32.xlu0 %v2960_v55, %s2675_s12 }
  0x63   : > { %820 = vrot.lane.b32.xlu2 %v2976_v56, %s2675_s12 }
  0x64   : > { %818 = vrot.lane.b32.xlu1 %v2980_v57, %s2675_s12 }
  0x66   : > { %822 = vrot.lane.b32.xlu0 %v2988_v58, %s2675_s12 }
  0x6b   : > { %826 = vrot.lane.b32.xlu2 %v3004_v59, %s2675_s12 }
  0x6c   : > { %824 = vrot.lane.b32.xlu1 %v3008_v60, %s2675_s12 }
  0x6e   : > { %828 = vrot.lane.b32.xlu0 %v3016_v61, %s2675_s12 }
  0x73   : > { %896 = vrot.lane.b32.xlu2 %v510_v62, %s2676_s13  ;;  %v3142_v62 = vld [vmem:[#allocation2 + $0xf2] sm:$0xff] }
  0x74   : > { %830 = vrot.lane.b32.xlu1 %v3034_v63, %s2675_s12  ;;  %s2323_s12 = sshll.u32 %s2320_s10, 4  ;;  %s2324_s12 = int_to_ptr.hbm [resolvable:$true] %s2323_s12 }
  0x76   : > { %898 = vrot.lane.b32.xlu0 %v511_v1, %s2676_s13  ;;  %v3146_v1 = vld [vmem:[#allocation2 + $0x10a] sm:$0xff] }
  0x7b   : > { %902 = vrot.lane.b32.xlu2 %v3042_v2, %s2676_s13 }
  0x7c   : > { %900 = vrot.lane.b32.xlu1 %v3044_v3, %s2676_s13 }
  0x7d   : > { %v3052_v0 = vpop.permute.xlu2 %776 }
  0x7e   : > { %4601 = vst [vmem:[#allocation6_spill] sm:$0xff] %v3052_v0  ;;  %904 = vrot.lane.b32.xlu0 %v3048_v4, %s2676_s13  ;;  %v3176_v0 = vld [vmem:[#allocation2 + $0x142] sm:$0xff] }
  0x7f   : > { %4620 = vst [vmem:[#allocation25_spill] sm:$0xff] %v3176_v0 }
  0x83   : > { %908 = vrot.lane.b32.xlu2 %v3056_v5, %s2676_s13 }
  0x84   : > { %906 = vrot.lane.b32.xlu1 %v3058_v6, %s2676_s13 }
  0x85   : > { %v3066_v8 = vpop.permute.xlu2 %778 }
  0x86   : > { %4602 = vst [vmem:[#allocation7_spill] sm:$0xff] %v3066_v8  ;;  %910 = vrot.lane.b32.xlu0 %v3062_v7, %s2676_s13  ;;  %v3160_v8 = vld [vmem:[#allocation2 + $0x112] sm:$0xff] }
  0x8b   : > { %914 = vrot.lane.b32.xlu2 %v3070_v9, %s2676_s13 }
  0x8c   : > { %912 = vrot.lane.b32.xlu1 %v3072_v10, %s2676_s13 }
  0x8d   : > { %v3080_v13 = vpop.permute.xlu2 %784 }
  0x8e   : > { %4603 = vst [vmem:[#allocation8_spill] sm:$0xff] %v3080_v13  ;;  %916 = vrot.lane.b32.xlu0 %v3076_v11, %s2676_s13 }
  0x90   : > { %v3084_v15 = vpop.permute.xlu0 %768 }
  0x91   : > { %4604 = vst [vmem:[#allocation9_spill] sm:$0xff] %v3084_v15  ;;  %v3164_v15 = vld [vmem:[#allocation2 + $0x12a] sm:$0xff] }
  0x93   : > { %920 = vrot.lane.b32.xlu2 %v3086_v16, %s2676_s13 }
  0x94   : > { %918 = vrot.lane.b32.xlu1 %v3088_v17, %s2676_s13 }
  0x95   : > { %v3096_v19 = vpop.permute.xlu2 %790 }
  0x96   : > { %4605 = vst [vmem:[#allocation10_spill] sm:$0xff] %v3096_v19  ;;  %922 = vrot.lane.b32.xlu0 %v3092_v18, %s2676_s13  ;;  %v3100_v20 = vpop.permute.xlu1 %772 }
  0x97   : > { %4606 = vst [vmem:[#allocation11_spill] sm:$0xff] %v3100_v20  ;;  %v3200_v20 = vld [vmem:[#allocation2 + $0x172] sm:$0xff] }
  0x98   : > { %v3102_v22 = vpop.permute.xlu0 %770  ;;  %4627 = vst [vmem:[#allocation32_spill] sm:$0xff] %v3200_v20 }
  0x99   : > { %4607 = vst [vmem:[#allocation12_spill] sm:$0xff] %v3102_v22  ;;  %v3178_v22 = vld [vmem:[#allocation2 + $0x13a] sm:$0xff] }
  0x9b   : > { %926 = vrot.lane.b32.xlu2 %v3104_v25, %s2676_s13 }
  0x9c   : > { %924 = vrot.lane.b32.xlu1 %v3106_v26, %s2676_s13 }
  0x9d   : > { %v3114_v31 = vpop.permute.xlu2 %796 }
  0x9e   : > { %4608 = vst [vmem:[#allocation13_spill] sm:$0xff] %v3114_v31  ;;  %928 = vrot.lane.b32.xlu0 %v3110_v27, %s2676_s13  ;;  %v3118_v32 = vpop.permute.xlu1 %774 }
  0x9f   : > { %4609 = vst [vmem:[#allocation14_spill] sm:$0xff] %v3118_v32  ;;  %v3212_v32 = vld [vmem:[#allocation2 + $0x20] sm:$0xff] }
  0xa0   : > { %v3120_v33 = vpop.permute.xlu0 %780  ;;  %4631 = vst [vmem:[#allocation36_spill] sm:$0xff] %v3212_v32 }
  0xa1   : > { %4610 = vst [vmem:[#allocation15_spill] sm:$0xff] %v3120_v33  ;;  %v3158_v33 = vld [vmem:[#allocation2 + $0x122] sm:$0xff] }
  0xa3   : > { %932 = vrot.lane.b32.xlu2 %v3122_v37, %s2676_s13 }
  0xa4   : > { %930 = vrot.lane.b32.xlu1 %v3124_v38, %s2676_s13 }
  0xa5   : > { %v3132_v43 = vpop.permute.xlu2 %802 }
  0xa6   : > { %4611 = vst [vmem:[#allocation16_spill] sm:$0xff] %v3132_v43  ;;  %934 = vrot.lane.b32.xlu0 %v3128_v39, %s2676_s13  ;;  %v3136_v44 = vpop.permute.xlu1 %782 }
  0xa7   : > { %4612 = vst [vmem:[#allocation17_spill] sm:$0xff] %v3136_v44 }
  0xa8   : > { %v3138_v45 = vpop.permute.xlu0 %786 }
  0xa9   : > { %4613 = vst [vmem:[#allocation18_spill] sm:$0xff] %v3138_v45 }
  0xab   : > { %938 = vrot.lane.b32.xlu2 %v3140_v49, %s2676_s13 }
  0xac   : > { %936 = vrot.lane.b32.xlu1 %v3142_v62, %s2676_s13 }
  0xad   : > { %v3150_v13 = vpop.permute.xlu2 %808 }
  0xae   : > { %4614 = vst [vmem:[#allocation19_spill] sm:$0xff] %v3150_v13  ;;  %940 = vrot.lane.b32.xlu0 %v3146_v1, %s2676_s13  ;;  %v3154_v19 = vpop.permute.xlu1 %788  ;;  %v3182_v13 = vld [vmem:[#allocation2 + $0x152] sm:$0xff] }
  0xaf   : > { %4615 = vst [vmem:[#allocation20_spill] sm:$0xff] %v3154_v19 }
  0xb0   : > { %v3156_v45 = vpop.permute.xlu0 %792  ;;  %4621 = vst [vmem:[#allocation26_spill] sm:$0xff] %v3182_v13 }
  0xb1   : > { %4616 = vst [vmem:[#allocation21_spill] sm:$0xff] %v3156_v45 }
  0xb3   : > { %944 = vrot.lane.b32.xlu2 %v3158_v33, %s2676_s13 }
  0xb4   : > { %942 = vrot.lane.b32.xlu1 %v3160_v8, %s2676_s13 }
  0xb5   : > { %v3168_v44 = vpop.permute.xlu2 %814 }
  0xb6   : > { %4617 = vst [vmem:[#allocation22_spill] sm:$0xff] %v3168_v44  ;;  %946 = vrot.lane.b32.xlu0 %v3164_v15, %s2676_s13  ;;  %v3172_v19 = vpop.permute.xlu1 %794 }
  0xb7   : > { %4618 = vst [vmem:[#allocation23_spill] sm:$0xff] %v3172_v19  ;;  %v3194_v19 = vld [vmem:[#allocation2 + $0x16a] sm:$0xff] }
  0xb8   : > { %v3174_v45 = vpop.permute.xlu0 %798  ;;  %4625 = vst [vmem:[#allocation30_spill] sm:$0xff] %v3194_v19 }
  0xb9   : > { %4619 = vst [vmem:[#allocation24_spill] sm:$0xff] %v3174_v45  ;;  %v3196_v45 = vld [vmem:[#allocation2 + $0x15a] sm:$0xff] }
  0xba   : > { %4626 = vst [vmem:[#allocation31_spill] sm:$0xff] %v3196_v45 }
  0xbb   : > { %950 = vrot.lane.b32.xlu2 %v3176_v0, %s2676_s13  ;;  %v3317_v0 = vld [vmem:[#allocation2 + $0xf0] sm:$0xff] }
  0xbc   : > { %948 = vrot.lane.b32.xlu1 %v3178_v22, %s2676_s13  ;;  %4665 = vst [vmem:[#allocation70_spill] sm:$0xff] %v3317_v0 }
  0xbd   : > { %v3186_v44 = vpop.permute.xlu2 %820 }
  0xbe   : > { %4622 = vst [vmem:[#allocation27_spill] sm:$0xff] %v3186_v44  ;;  %952 = vrot.lane.b32.xlu0 %v3182_v13, %s2676_s13  ;;  %v3190_v43 = vpop.permute.xlu1 %800  ;;  %v3214_v13 = vld [vmem:[#allocation2 + $0x18] sm:$0xff] }
  0xbf   : > { %4623 = vst [vmem:[#allocation28_spill] sm:$0xff] %v3190_v43 }
  0xc0   : > { %v3192_v31 = vpop.permute.xlu0 %804  ;;  %4632 = vst [vmem:[#allocation37_spill] sm:$0xff] %v3214_v13 }
  0xc1   : > { %4624 = vst [vmem:[#allocation29_spill] sm:$0xff] %v3192_v31 }
  0xc3   : > { %956 = vrot.lane.b32.xlu2 %v3194_v19, %s2676_s13  ;;  %v3220_v19 = vld [vmem:[#allocation2 + $0x30] sm:$0xff] }
  0xc4   : > { %954 = vrot.lane.b32.xlu1 %v3196_v45, %s2676_s13  ;;  %4633 = vst [vmem:[#allocation38_spill] sm:$0xff] %v3220_v19  ;;  %v451_v45 = vld [vmem:[#allocation2 + $0x38] sm:$0xff] }
  0xc5   : > { %v3204_v44 = vpop.permute.xlu2 %826 }
  0xc6   : > { %4628 = vst [vmem:[#allocation33_spill] sm:$0xff] %v3204_v44  ;;  %958 = vrot.lane.b32.xlu0 %v3200_v20, %s2676_s13  ;;  %v3208_v43 = vpop.permute.xlu1 %806  ;;  %v3230_v20 = vld [vmem:[#allocation2 + $0x48] sm:$0xff] }
  0xc7   : > { %4629 = vst [vmem:[#allocation34_spill] sm:$0xff] %v3208_v43 }
  0xc8   : > { %v3210_v31 = vpop.permute.xlu0 %810  ;;  %4637 = vst [vmem:[#allocation42_spill] sm:$0xff] %v3230_v20 }
  0xc9   : > { %4630 = vst [vmem:[#allocation35_spill] sm:$0xff] %v3210_v31 }
  0xcb   : > { %1026 = vrot.lane.b32.xlu2 %v3212_v32, %s2677_s14 }
  0xcc   : > { %1024 = vrot.lane.b32.xlu1 %v3214_v13, %s2677_s14  ;;  %v3235_v13 = vld [vmem:[#allocation2 + $0x50] sm:$0xff] }
  0xcd   : > { %v3222_v44 = vpop.permute.xlu2 %896  ;;  %4638 = vst [vmem:[#allocation43_spill] sm:$0xff] %v3235_v13 }
  0xce   : > { %4634 = vst [vmem:[#allocation39_spill] sm:$0xff] %v3222_v44  ;;  %1028 = vrot.lane.b32.xlu0 %v3220_v19, %s2677_s14  ;;  %v3226_v43 = vpop.permute.xlu1 %812 }
  0xcf   : > { %4635 = vst [vmem:[#allocation40_spill] sm:$0xff] %v3226_v43  ;;  %v3245_v43 = vld [vmem:[#allocation2 + $0x68] sm:$0xff] }
  0xd0   : > { %v3228_v31 = vpop.permute.xlu0 %816  ;;  %4642 = vst [vmem:[#allocation47_spill] sm:$0xff] %v3245_v43 }
  0xd1   : > { %4636 = vst [vmem:[#allocation41_spill] sm:$0xff] %v3228_v31  ;;  %v454_v31 = vld [vmem:[#allocation2 + $0x60] sm:$0xff] }
  0xd3   : > { %1032 = vrot.lane.b32.xlu2 %v3230_v20, %s2677_s14 }
  0xd4   : > { %1030 = vrot.lane.b32.xlu1 %v451_v45, %s2677_s14  ;;  %v3250_v45 = vld [vmem:[#allocation2 + $0x78] sm:$0xff] }
  0xd5   : > { %v3237_v32 = vpop.permute.xlu2 %902  ;;  %4643 = vst [vmem:[#allocation48_spill] sm:$0xff] %v3250_v45 }
  0xd6   : > { %4639 = vst [vmem:[#allocation44_spill] sm:$0xff] %v3237_v32  ;;  %1034 = vrot.lane.b32.xlu0 %v3235_v13, %s2677_s14  ;;  %v3241_v44 = vpop.permute.xlu1 %818  ;;  %v457_v32 = vld [vmem:[#allocation2 + $0x80] sm:$0xff] }
  0xd7   : > { %4640 = vst [vmem:[#allocation45_spill] sm:$0xff] %v3241_v44 }
  0xd8   : > { %v3243_v19 = vpop.permute.xlu0 %822 }
  0xd9   : > { %4641 = vst [vmem:[#allocation46_spill] sm:$0xff] %v3243_v19  ;;  %v3260_v19 = vld [vmem:[#allocation2 + $0x90] sm:$0xff] }
  0xda   : > { %4647 = vst [vmem:[#allocation52_spill] sm:$0xff] %v3260_v19 }
  0xdb   : > { %1038 = vrot.lane.b32.xlu2 %v3245_v43, %s2677_s14 }
  0xdc   : > { %1036 = vrot.lane.b32.xlu1 %v454_v31, %s2677_s14  ;;  %v3265_v31 = vld [vmem:[#allocation2 + $0x98] sm:$0xff] }
  0xdd   : > { %v3252_v20 = vpop.permute.xlu2 %908  ;;  %4648 = vst [vmem:[#allocation53_spill] sm:$0xff] %v3265_v31 }
  0xde   : > { %4644 = vst [vmem:[#allocation49_spill] sm:$0xff] %v3252_v20  ;;  %1040 = vrot.lane.b32.xlu0 %v3250_v45, %s2677_s14  ;;  %v3256_v13 = vpop.permute.xlu1 %824  ;;  %v3277_v45 = vld [vmem:[#allocation2 + $0xa8] sm:$0xff] }
  0xdf   : > { %4645 = vst [vmem:[#allocation50_spill] sm:$0xff] %v3256_v13 }
  0xe0   : > { %v3258_v44 = vpop.permute.xlu0 %828  ;;  %4653 = vst [vmem:[#allocation58_spill] sm:$0xff] %v3277_v45 }
  0xe1   : > { %4646 = vst [vmem:[#allocation51_spill] sm:$0xff] %v3258_v44  ;;  %v3275_v44 = vld [vmem:[#allocation2 + $0xb0] sm:$0xff] }
  0xe2   : > { %4652 = vst [vmem:[#allocation57_spill] sm:$0xff] %v3275_v44 }
  0xe3   : > { %1044 = vrot.lane.b32.xlu2 %v3260_v19, %s2677_s14  ;;  %v3295_v19 = vld [vmem:[#allocation2 + $0xc8] sm:$0xff] }
  0xe4   : > { %1042 = vrot.lane.b32.xlu1 %v457_v32, %s2677_s14  ;;  %v3283_v32 = vld [vmem:[#allocation2 + $0xc0] sm:$0xff]  ;;  %4659 = vst [vmem:[#allocation64_spill] sm:$0xff] %v3295_v19 }
  0xe5   : > { %v3267_v43 = vpop.permute.xlu2 %914  ;;  %4654 = vst [vmem:[#allocation59_spill] sm:$0xff] %v3283_v32 }
  0xe6   : > { %4649 = vst [vmem:[#allocation54_spill] sm:$0xff] %v3267_v43  ;;  %1046 = vrot.lane.b32.xlu0 %v3265_v31, %s2677_s14  ;;  %v3271_v20 = vpop.permute.xlu1 %830 }
  0xe7   : > { %4650 = vst [vmem:[#allocation55_spill] sm:$0xff] %v3271_v20  ;;  %v3293_v20 = vld [vmem:[#allocation2 + $0xd8] sm:$0xff] }
  0xe8   : > { %v3273_v13 = vpop.permute.xlu0 %898  ;;  %4658 = vst [vmem:[#allocation63_spill] sm:$0xff] %v3293_v20 }
  0xe9   : > { %4651 = vst [vmem:[#allocation56_spill] sm:$0xff] %v3273_v13 }
  0xeb   : > { %1050 = vrot.lane.b32.xlu2 %v3275_v44, %s2677_s14  ;;  %v382_v44 = vld [vmem:[%s2782_s11 + $0xf0] sm:$0xff] }
  0xec   : > { %1048 = vrot.lane.b32.xlu1 %v3277_v45, %s2677_s14  ;;  %v383_v45 = vld [vmem:[%s2782_s11 + $0xf8] sm:$0xff]  ;;  %415 = vst.msk [vmem:[#allocation2 + $0x181] sm:$0xff] %vm306_vm0, %v382_v44  ;;  %v3323_v44 = vld [vmem:[#allocation2 + $0x108] sm:$0xff] }
  0xed   : > { %v3285_v43 = vpop.permute.xlu2 %920  ;;  %416 = vst.msk [vmem:[#allocation2 + $0x189] sm:$0xff] %vm306_vm0, %v383_v45 }
  0xee   : > { %4655 = vst [vmem:[#allocation60_spill] sm:$0xff] %v3285_v43  ;;  %1052 = vrot.lane.b32.xlu0 %v3283_v32, %s2677_s14  ;;  %v3289_v31 = vpop.permute.xlu1 %900  ;;  %v3304_v43 = vld [vmem:[#allocation2 + $0xe0] sm:$0xff] }
  0xef   : > { %4656 = vst [vmem:[#allocation61_spill] sm:$0xff] %v3289_v31 }
  0xf0   : > { %v3291_v13 = vpop.permute.xlu0 %904  ;;  %4660 = vst [vmem:[#allocation65_spill] sm:$0xff] %v3304_v43 }
  0xf1   : > { %4657 = vst [vmem:[#allocation62_spill] sm:$0xff] %v3291_v13 }
  0xf2   : > { %4666 = vst [vmem:[#allocation71_spill] sm:$0xff] %v3323_v44 }
  0xf3   : > { %1056 = vrot.lane.b32.xlu2 %v3293_v20, %s2677_s14  ;;  %v3315_v20 = vld [vmem:[#allocation2 + $0xf8] sm:$0xff] }
  0xf4   : > { %1054 = vrot.lane.b32.xlu1 %v3295_v19, %s2677_s14  ;;  %4664 = vst [vmem:[#allocation69_spill] sm:$0xff] %v3315_v20  ;;  %v3333_v19 = vld [vmem:[#allocation2 + $0x120] sm:$0xff] }
  0xf5   : > { %v3306_v32 = vpop.permute.xlu2 %926 }
  0xf6   : > { %4661 = vst [vmem:[#allocation66_spill] sm:$0xff] %v3306_v32  ;;  %1058 = vrot.lane.b32.xlu0 %v3304_v43, %s2677_s14  ;;  %v3311_v13 = vpop.permute.xlu1 %906  ;;  %v3335_v43 = vld [vmem:[#allocation2 + $0x110] sm:$0xff]  ;;  %v3369_v32 = vld [vmem:[#allocation2 + $0x168] sm:$0xff] }
  0xf7   : > { %4662 = vst [vmem:[#allocation67_spill] sm:$0xff] %v3311_v13 }
  0xf8   : > { %v3313_v31 = vpop.permute.xlu0 %910  ;;  %4670 = vst [vmem:[#allocation75_spill] sm:$0xff] %v3335_v43 }
  0xf9   : > { %4663 = vst [vmem:[#allocation68_spill] sm:$0xff] %v3313_v31 }
  0xfa   : > { %4681 = vst [vmem:[#allocation86_spill] sm:$0xff] %v3369_v32 }
  0xfb   : > { %1062 = vrot.lane.b32.xlu2 %v3315_v20, %s2677_s14  ;;  %v3353_v20 = vld [vmem:[#allocation2 + $0x138] sm:$0xff] }
  0xfc   : > { %1060 = vrot.lane.b32.xlu1 %v3317_v0, %s2677_s14  ;;  %v3341_v0 = vld [vmem:[#allocation2 + $0x128] sm:$0xff]  ;;  %4676 = vst [vmem:[#allocation81_spill] sm:$0xff] %v3353_v20 }
  0xfd   : > { %v3325_v45 = vpop.permute.xlu2 %932  ;;  %4671 = vst [vmem:[#allocation76_spill] sm:$0xff] %v3341_v0 }
  0xfe   : > { %4667 = vst [vmem:[#allocation72_spill] sm:$0xff] %v3325_v45  ;;  %1064 = vrot.lane.b32.xlu0 %v3323_v44, %s2677_s14  ;;  %v3329_v13 = vpop.permute.xlu1 %912  ;;  %v3351_v44 = vld [vmem:[#allocation2 + $0x140] sm:$0xff] }
  0xff   : > { %4668 = vst [vmem:[#allocation73_spill] sm:$0xff] %v3329_v13 }
 0x100   : > { %v3331_v31 = vpop.permute.xlu0 %916  ;;  %4675 = vst [vmem:[#allocation80_spill] sm:$0xff] %v3351_v44 }
 0x101   : > { %4669 = vst [vmem:[#allocation74_spill] sm:$0xff] %v3331_v31 }
 0x103   : > { %1068 = vrot.lane.b32.xlu2 %v3333_v19, %s2677_s14 }
 0x104   : > { %1066 = vrot.lane.b32.xlu1 %v3335_v43, %s2677_s14  ;;  %v3359_v43 = vld [vmem:[#allocation2 + $0x150] sm:$0xff] }
 0x105   : > { %v3343_v45 = vpop.permute.xlu2 %938  ;;  %4677 = vst [vmem:[#allocation82_spill] sm:$0xff] %v3359_v43 }
 0x106   : > { %4672 = vst [vmem:[#allocation77_spill] sm:$0xff] %v3343_v45  ;;  %1070 = vrot.lane.b32.xlu0 %v3341_v0, %s2677_s14  ;;  %v3347_v13 = vpop.permute.xlu1 %918  ;;  %v3371_v0 = vld [vmem:[#allocation2 + $0x158] sm:$0xff] }
 0x107   : > { %4673 = vst [vmem:[#allocation78_spill] sm:$0xff] %v3347_v13 }
 0x108   : > { %v3349_v31 = vpop.permute.xlu0 %922  ;;  %4682 = vst [vmem:[#allocation87_spill] sm:$0xff] %v3371_v0 }
 0x109   : > { %4674 = vst [vmem:[#allocation79_spill] sm:$0xff] %v3349_v31 }
 0x10b   : > { %1074 = vrot.lane.b32.xlu2 %v3351_v44, %s2677_s14 }
 0x10c   : > { %1072 = vrot.lane.b32.xlu1 %v3353_v20, %s2677_s14  ;;  %v3377_v20 = vld [vmem:[#allocation2 + $0x170] sm:$0xff] }
 0x10d   : > { %v3361_v45 = vpop.permute.xlu2 %944 }
 0x10e   : > { %4678 = vst [vmem:[#allocation83_spill] sm:$0xff] %v3361_v45  ;;  %1076 = vrot.lane.b32.xlu0 %v3359_v43, %s2677_s14  ;;  %v3365_v13 = vpop.permute.xlu1 %924  ;;  %v574_v43 = vld [vmem:[#allocation2 + $0x188] sm:$0xff]  ;;  %v573_v45 = vld [vmem:[#allocation2 + $0x180] sm:$0xff] }
 0x10f   : > { %4679 = vst [vmem:[#allocation84_spill] sm:$0xff] %v3365_v13 }
 0x110   : > { %v3367_v31 = vpop.permute.xlu0 %928 }
 0x111   : > { %4680 = vst [vmem:[#allocation85_spill] sm:$0xff] %v3367_v31 }
 0x113   : > { %1080 = vrot.lane.b32.xlu2 %v3369_v32, %s2677_s14 }
 0x114   : > { %1078 = vrot.lane.b32.xlu1 %v3371_v0, %s2677_s14 }
 0x115   : > { %v3379_v44 = vpop.permute.xlu2 %950 }
 0x116   : > { %4683 = vst [vmem:[#allocation88_spill] sm:$0xff] %v3379_v44  ;;  %1082 = vrot.lane.b32.xlu0 %v3377_v20, %s2677_s14  ;;  %v3383_v13 = vpop.permute.xlu1 %930 }
 0x118   : > { %v3385_v31 = vpop.permute.xlu0 %934 }
 0x119   : > { %4684 = vst [vmem:[#allocation89_spill] sm:$0xff] %v3385_v31 }
 0x11b   : > { %1086 = vrot.lane.b32.xlu2 %v574_v43, %s2677_s14 }
 0x11c   : > { %1084 = vrot.lane.b32.xlu1 %v573_v45, %s2677_s14  ;;  %s2608_s14 = sshra.s32 %s2324_s12, 4  ;;  %s2609_s14 = int_to_ptr.hbm [resolvable:$true] %s2608_s14 }
 0x11d   : > { %v3389_v32 = vpop.permute.xlu2 %956  ;;  %p2615_p1 = scmp.lt.s32.totalorder %s2609_s14, %s4554_s5 }
 0x11e   : > { %1152 = vrot.lane.b32.xlu0 %v2810_v14, %s2678_s15  ;;  %v3393_v0 = vpop.permute.xlu1 %936 }
 0x120   : > { %v3395_v44 = vpop.permute.xlu0 %940 }
 0x123   : > { %1156 = vrot.lane.b32.xlu2 %v2804_v12, %s2678_s15 }
 0x124   : > { %1154 = vrot.lane.b32.xlu1 %v2829_v23, %s2678_s15 }
 0x125   : > { %v3401_v31 = vpop.permute.xlu2 %1026 }
 0x126   : > { %1158 = vrot.lane.b32.xlu0 %v2825_v21, %s2678_s15  ;;  %v3405_v43 = vpop.permute.xlu1 %942 }
 0x128   : > { %v3407_v45 = vpop.permute.xlu0 %946 }
 0x12b   : > { %1162 = vrot.lane.b32.xlu2 %v2850_v29, %s2678_s15 }
 0x12c   : > { %1160 = vrot.lane.b32.xlu1 %v2835_v24, %s2678_s15 }
 0x12d   : > { %v3413_v14 = vpop.permute.xlu2 %1032 }
 0x12e   : > { %1164 = vrot.lane.b32.xlu0 %v2848_v28, %s2678_s15  ;;  %v3417_v12 = vpop.permute.xlu1 %948 }
 0x130   : > { %v3419_v23 = vpop.permute.xlu0 %952 }
 0x133   : > { %1168 = vrot.lane.b32.xlu2 %v2868_v35, %s2678_s15 }
 0x134   : > { %1166 = vrot.lane.b32.xlu1 %v2854_v30, %s2678_s15 }
 0x135   : > { %v3425_v21 = vpop.permute.xlu2 %1038 }
 0x136   : > { %1170 = vrot.lane.b32.xlu0 %v2866_v34, %s2678_s15  ;;  %v3429_v24 = vpop.permute.xlu1 %954 }
 0x138   : > { %v3431_v29 = vpop.permute.xlu0 %958 }
 0x13b   : > { %1174 = vrot.lane.b32.xlu2 %v2886_v41, %s2678_s15 }
 0x13c   : > { %1172 = vrot.lane.b32.xlu1 %v2872_v36, %s2678_s15 }
 0x13d   : > { %v3437_v28 = vpop.permute.xlu2 %1044 }
 0x13e   : > { %4685 = vst [vmem:[#allocation90_spill] sm:$0xff] %v3437_v28  ;;  %1176 = vrot.lane.b32.xlu0 %v2884_v40, %s2678_s15  ;;  %v3441_v30 = vpop.permute.xlu1 %1024  ;;  %v4715_v28 = vld [vmem:[#allocation14_spill] sm:$0xff] }
 0x13f   : > { %4686 = vst [vmem:[#allocation91_spill] sm:$0xff] %v3441_v30 }
 0x140   : > { %v3443_v35 = vpop.permute.xlu0 %1028 }
 0x143   : > { %1180 = vrot.lane.b32.xlu2 %v2904_v47, %s2678_s15 }
 0x144   : > { %1178 = vrot.lane.b32.xlu1 %v2890_v42, %s2678_s15 }
 0x145   : > { %v3449_v34 = vpop.permute.xlu2 %1050 }
 0x146   : > { %1182 = vrot.lane.b32.xlu0 %v2902_v46, %s2678_s15  ;;  %v3453_v36 = vpop.permute.xlu1 %1030 }
 0x148   : > { %v3455_v41 = vpop.permute.xlu0 %1034 }
 0x149   : > { %4687 = vst [vmem:[#allocation92_spill] sm:$0xff] %v3455_v41 }
 0x14b   : > { %1186 = vrot.lane.b32.xlu2 %v2924_v51, %s2678_s15 }
 0x14c   : > { %1184 = vrot.lane.b32.xlu1 %v2908_v48, %s2678_s15 }
 0x14d   : > { %v3461_v40 = vpop.permute.xlu2 %1056 }
 0x14e   : > { %1188 = vrot.lane.b32.xlu0 %v2920_v50, %s2678_s15  ;;  %v3465_v42 = vpop.permute.xlu1 %1036 }
 0x14f   : > { %4688 = vst [vmem:[#allocation93_spill] sm:$0xff] %v3465_v42  ;;  %v640_v42 = vld [vmem:[#allocation2 + $0x30] sm:$0xff] }
 0x150   : > { %v3467_v47 = vpop.permute.xlu0 %1040 }
 0x151   : > { %4689 = vst [vmem:[#allocation94_spill] sm:$0xff] %v3467_v47 }
 0x153   : > { %1192 = vrot.lane.b32.xlu2 %v2952_v54, %s2678_s15 }
 0x154   : > { %1190 = vrot.lane.b32.xlu1 %v2932_v52, %s2678_s15 }
 0x155   : > { %v3473_v46 = vpop.permute.xlu2 %1062 }
 0x156   : > { %1194 = vrot.lane.b32.xlu0 %v2948_v53, %s2678_s15  ;;  %v3477_v48 = vpop.permute.xlu1 %1042 }
 0x157   : > { %4690 = vst [vmem:[#allocation95_spill] sm:$0xff] %v3477_v48  ;;  %v606_v48 = vld [vmem:[#allocation2 + $0x189] sm:$0xff] }
 0x158   : > { %v3479_v51 = vpop.permute.xlu0 %1046 }
 0x159   : > { %4691 = vst [vmem:[#allocation96_spill] sm:$0xff] %v3479_v51 }
 0x15b   : > { %1198 = vrot.lane.b32.xlu2 %v2980_v57, %s2678_s15 }
 0x15c   : > { %1196 = vrot.lane.b32.xlu1 %v2960_v55, %s2678_s15 }
 0x15d   : > { %v3485_v50 = vpop.permute.xlu2 %1068 }
 0x15e   : > { %1200 = vrot.lane.b32.xlu0 %v2976_v56, %s2678_s15  ;;  %v3489_v52 = vpop.permute.xlu1 %1048  ;;  %v3507_v56 = vld [vmem:[#allocation2 + $0x181] sm:$0xff] }
 0x15f   : > { %4692 = vst [vmem:[#allocation97_spill] sm:$0xff] %v3489_v52 }
 0x160   : > { %v3491_v54 = vpop.permute.xlu0 %1052  ;;  %4693 = vst [vmem:[#allocation98_spill] sm:$0xff] %v3507_v56 }
 0x163   : > { %1204 = vrot.lane.b32.xlu2 %v3008_v60, %s2678_s15 }
 0x164   : > { %1202 = vrot.lane.b32.xlu1 %v2988_v58, %s2678_s15 }
 0x165   : > { %v3497_v53 = vpop.permute.xlu2 %1074 }
 0x166   : > { %1206 = vrot.lane.b32.xlu0 %v3004_v59, %s2678_s15  ;;  %v3501_v55 = vpop.permute.xlu1 %1054 }
 0x168   : > { %v3503_v57 = vpop.permute.xlu0 %1058 }
 0x16b   : > { %1210 = vrot.lane.b32.xlu2 %v3034_v63, %s2678_s15 }
 0x16c   : > { %1208 = vrot.lane.b32.xlu1 %v3016_v61, %s2678_s15 }
 0x16d   : > { %v3511_v60 = vpop.permute.xlu2 %1080 }
 0x16e   : > { %1212 = vrot.lane.b32.xlu0 %v3507_v56, %s2678_s15  ;;  %v3515_v58 = vpop.permute.xlu1 %1060 }
 0x170   : > { %v3517_v59 = vpop.permute.xlu0 %1064 }
 0x173   : > { %1280 = vrot.lane.b32.xlu2 %v3044_v3, %s2679_s16 }
 0x174   : > { %1214 = vrot.lane.b32.xlu1 %v606_v48, %s2678_s15  ;;  %s2610_s15 = scalar_lea.hbm %s2609_s14, 256 }
 0x175   : > { %v3522_v63 = vpop.permute.xlu2 %1086  ;;  %p2611_p12 = scmp.ne.s32.totalorder %s2609_s14, %s2610_s15 }
 0x176   : > { %1282 = vrot.lane.b32.xlu0 %v3042_v2, %s2679_s16  ;;  %v3526_v61 = vpop.permute.xlu1 %1066 }
 0x177   : > { %p2612_p13 = pnand %p2611_p12, %p2754_p4 }
 0x178   : > { %v3528_v47 = vpop.permute.xlu0 %1070 }
 0x179   : > { %p2613_p0 = pneg %p2612_p13 }
 0x17b   : > { %1286 = vrot.lane.b32.xlu2 %v3058_v6, %s2679_s16 }
 0x17c   : > { %1284 = vrot.lane.b32.xlu1 %v3048_v4, %s2679_s16 }
 0x17d   : > { %v3534_v56 = vpop.permute.xlu2 %1156 }
 0x17e   : > { %1288 = vrot.lane.b32.xlu0 %v3056_v5, %s2679_s16  ;;  %v3538_v3 = vpop.permute.xlu1 %1072 }
 0x180   : > { %v3540_v48 = vpop.permute.xlu0 %1076 }
 0x183   : > { %1292 = vrot.lane.b32.xlu2 %v3072_v10, %s2679_s16 }
 0x184   : > { %1290 = vrot.lane.b32.xlu1 %v3062_v7, %s2679_s16 }
 0x185   : > { %v3546_v2 = vpop.permute.xlu2 %1162 }
 0x186   : > { %4694 = vst [vmem:[#allocation99_spill] sm:$0xff] %v3546_v2  ;;  %1294 = vrot.lane.b32.xlu0 %v3070_v9, %s2679_s16  ;;  %v3550_v4 = vpop.permute.xlu1 %1078 }
 0x188   : > { %v3552_v6 = vpop.permute.xlu0 %1082 }
 0x189   : > { %4695 = vst [vmem:[#allocation100_spill] sm:$0xff] %v3552_v6 }
 0x18b   : > { %1298 = vrot.lane.b32.xlu2 %v3088_v17, %s2679_s16 }
 0x18c   : > { %1296 = vrot.lane.b32.xlu1 %v3076_v11, %s2679_s16 }
 0x18d   : > { %v3558_v5 = vpop.permute.xlu2 %1168 }
 0x18e   : > { %4696 = vst [vmem:[#allocation101_spill] sm:$0xff] %v3558_v5  ;;  %1300 = vrot.lane.b32.xlu0 %v3086_v16, %s2679_s16  ;;  %v3562_v7 = vpop.permute.xlu1 %1084  ;;  %v4705_v5 = vld [vmem:[#allocation26_spill] sm:$0xff] }
 0x190   : > { %v3564_v10 = vpop.permute.xlu0 %1152 }
 0x191   : > { %4697 = vst [vmem:[#allocation102_spill] sm:$0xff] %v3564_v10 }
 0x193   : > { %1304 = vrot.lane.b32.xlu2 %v3106_v26, %s2679_s16 }
 0x194   : > { %1302 = vrot.lane.b32.xlu1 %v3092_v18, %s2679_s16 }
 0x195   : > { %v3570_v9 = vpop.permute.xlu2 %1174 }
 0x196   : > { %4698 = vst [vmem:[#allocation103_spill] sm:$0xff] %v3570_v9  ;;  %1306 = vrot.lane.b32.xlu0 %v3104_v25, %s2679_s16  ;;  %v3574_v11 = vpop.permute.xlu1 %1154  ;;  %v3642_v9 = vld [vmem:[#allocation2 + $0x18a] sm:$0xff] }
 0x198   : > { %v3576_v17 = vpop.permute.xlu0 %1158 }
 0x19b   : > { %1310 = vrot.lane.b32.xlu2 %v3124_v38, %s2679_s16 }
 0x19c   : > { %1308 = vrot.lane.b32.xlu1 %v3110_v27, %s2679_s16 }
 0x19d   : > { %v3582_v16 = vpop.permute.xlu2 %1180 }
 0x19e   : > { %1312 = vrot.lane.b32.xlu0 %v3122_v37, %s2679_s16  ;;  %v3586_v18 = vpop.permute.xlu1 %1160 }
 0x1a0   : > { %v3588_v26 = vpop.permute.xlu0 %1164 }
 0x1a1   : > { %4699 = vst [vmem:[#allocation104_spill] sm:$0xff] %v3588_v26  ;;  %v641_v26 = vld [vmem:[#allocation2 + $0x38] sm:$0xff] }
 0x1a3   : > { %1316 = vrot.lane.b32.xlu2 %v3142_v62, %s2679_s16 }
 0x1a4   : > { %1314 = vrot.lane.b32.xlu1 %v3128_v39, %s2679_s16 }
 0x1a5   : > { %v3594_v25 = vpop.permute.xlu2 %1186 }
 0x1a6   : > { %1318 = vrot.lane.b32.xlu0 %v3140_v49, %s2679_s16  ;;  %v3598_v27 = vpop.permute.xlu1 %1166 }
 0x1a8   : > { %v3600_v38 = vpop.permute.xlu0 %1170 }
 0x1a9   : > { %4700 = vst [vmem:[#allocation105_spill] sm:$0xff] %v3600_v38 }
 0x1ab   : > { %1322 = vrot.lane.b32.xlu2 %v3160_v8, %s2679_s16  ;;  %v4703_v8 = vld [vmem:[#allocation25_spill] sm:$0xff] }
 0x1ac   : > { %1320 = vrot.lane.b32.xlu1 %v3146_v1, %s2679_s16 }
 0x1ad   : > { %v3606_v37 = vpop.permute.xlu2 %1192 }
 0x1ae   : > { %1324 = vrot.lane.b32.xlu0 %v3158_v33, %s2679_s16  ;;  %v3610_v39 = vpop.permute.xlu1 %1172  ;;  %v4704_v33 = vld [vmem:[#allocation31_spill] sm:$0xff] }
 0x1af   : > { %4701 = vst [vmem:[#allocation106_spill] sm:$0xff] %v3610_v39  ;;  %v4714_v39 = vld [vmem:[#allocation83_spill] sm:$0xff] }
 0x1b0   : > { %v3612_v62 = vpop.permute.xlu0 %1176  ;;  %4708 = vst [vmem:[#allocation31_spill] sm:$0xff] %v3642_v9 }
 0x1b1   : > { %4702 = vst [vmem:[#allocation107_spill] sm:$0xff] %v3612_v62 }
 0x1b3   : > { %1328 = vrot.lane.b32.xlu2 %v3178_v22, %s2679_s16  ;;  %v4706_v22 = vld [vmem:[#allocation30_spill] sm:$0xff] }
 0x1b4   : > { %1326 = vrot.lane.b32.xlu1 %v3164_v15, %s2679_s16 }
 0x1b5   : > { %v3618_v49 = vpop.permute.xlu2 %1198 }
 0x1b6   : > { %1330 = vrot.lane.b32.xlu0 %v4703_v8, %s2679_s16  ;;  %v3622_v1 = vpop.permute.xlu1 %1178  ;;  %v3638_v8 = vld [vmem:[#allocation2 + $0x182] sm:$0xff] }
 0x1b7   : > { %4707 = vst [vmem:[#allocation25_spill] sm:$0xff] %v3638_v8 }
 0x1b8   : > { %v3624_v38 = vpop.permute.xlu0 %1182 }
 0x1bb   : > { %1334 = vrot.lane.b32.xlu2 %v4704_v33, %s2679_s16  ;;  %v4709_v33 = vld [vmem:[#allocation32_spill] sm:$0xff] }
 0x1bc   : > { %1332 = vrot.lane.b32.xlu1 %v4705_v5, %s2679_s16 }
 0x1bd   : > { %v3630_v62 = vpop.permute.xlu2 %1204 }
 0x1be   : > { %1336 = vrot.lane.b32.xlu0 %v4706_v22, %s2679_s16  ;;  %v3634_v15 = vpop.permute.xlu1 %1184 }
 0x1c0   : > { %v3636_v52 = vpop.permute.xlu0 %1188 }
 0x1c3   : > { %1340 = vrot.lane.b32.xlu2 %v3638_v8, %s2679_s16 }
 0x1c4   : > { %1338 = vrot.lane.b32.xlu1 %v4709_v33, %s2679_s16  ;;  %v4712_v33 = vld [vmem:[#allocation41_spill] sm:$0xff] }
 0x1c5   : > { %v3646_v5 = vpop.permute.xlu2 %1210  ;;  %v1785_v2 = vsel %vm306_vm0, %v3333_v19, %v4712_v33  ;;  %v4716_v19 = vld [vmem:[#allocation36_spill] sm:$0xff] }
 0x1c6   : > { %4710 = vst [vmem:[#allocation26_spill] sm:$0xff] %v3646_v5  ;;  %1342 = vrot.lane.b32.xlu0 %v3642_v9, %s2679_s16  ;;  %v3650_v22 = vpop.permute.xlu1 %1190  ;;  %v4713_v9 = vld [vmem:[#allocation42_spill] sm:$0xff]  ;;  %v1818_v10 = vsel %vm1793_vm3, %v1785_v2, %v4714_v39  ;;  %v1764_v33 = vsel %vm306_vm0, %v4716_v19, %v4715_v28  ;;  %v4718_v2 = vld [vmem:[#allocation45_spill] sm:$0xff]  ;;  %v4719_v39 = vld [vmem:[#allocation76_spill] sm:$0xff] }
 0x1c7   : > { %v1786_v6 = vsel %vm306_vm0, %v4719_v39, %v4718_v2  ;;  %v4721_v19 = vld [vmem:[#allocation46_spill] sm:$0xff] }
 0x1c8   : > { %v3652_v51 = vpop.permute.xlu0 %1194 }
 0x1cb   : > { %1410 = vrot.lane.b32.xlu2 %v641_v26, %s2680_s17 }
 0x1cc   : > { %1408 = vrot.lane.b32.xlu1 %v640_v42, %s2680_s17  ;;  %v1851_v42 = vsel %vm1826_vm4, %v1818_v10, %v3538_v3  ;;  %v4720_v10 = vld [vmem:[#allocation43_spill] sm:$0xff] }
 0x1cd   : > { %v3656_v8 = vpop.permute.xlu2 %1280 }
 0x1ce   : > { %4711 = vst [vmem:[#allocation30_spill] sm:$0xff] %v3656_v8  ;;  %1412 = vrot.lane.b32.xlu0 %v4713_v9, %s2680_s17  ;;  %v3663_v41 = vpop.permute.xlu1 %1196  ;;  %v644_v8 = vld [vmem:[#allocation2 + $0x60] sm:$0xff] }
 0x1cf   : > { %v4717_v9 = vld [vmem:[#allocation44_spill] sm:$0xff] }
 0x1d0   : > { %v1201_v26 = vpop.permute.xlu0 %1200  ;;  %v1797_v5 = vsel %vm1793_vm3, %v1764_v33, %v4717_v9 }
 0x1d1   : > { %v3670_v30 = vsel %vm1859_vm5, %v1851_v42, %v1201_v26  ;;  %v1830_v3 = vsel %vm1826_vm4, %v1797_v5, %v3453_v36  ;;  %v1819_v42 = vsel %vm1793_vm3, %v1786_v6, %v3407_v45  ;;  %v4723_v36 = vld [vmem:[#allocation47_spill] sm:$0xff]  ;;  %v4725_v45 = vld [vmem:[#allocation88_spill] sm:$0xff] }
 0x1d2   : > { %v1863_v28 = vsel %vm1859_vm5, %v1830_v3, %v3576_v17  ;;  %v1852_v9 = vsel %vm1826_vm4, %v1819_v42, %v3497_v53  ;;  %v4726_v42 = vld [vmem:[#allocation48_spill] sm:$0xff] }
 0x1d3   : > { %1416 = vrot.lane.b32.xlu2 %v644_v8, %s2680_s17  ;;  %v4722_v8 = vld [vmem:[#allocation80_spill] sm:$0xff] }
 0x1d4   : > { %1414 = vrot.lane.b32.xlu1 %v4720_v10, %s2680_s17  ;;  %v1788_v33 = vsel %vm306_vm0, %v4722_v8, %v4721_v19  ;;  %v647_v19 = vld [vmem:[#allocation2 + $0x80] sm:$0xff] }
 0x1d5   : > { %v1287_v26 = vpop.permute.xlu2 %1286  ;;  %v1821_v6 = vsel %vm1793_vm3, %v1788_v33, %v4725_v45 }
 0x1d6   : > { %1418 = vrot.lane.b32.xlu0 %v4723_v36, %s2680_s17  ;;  %v3697_v5 = vsel %vm1892_vm6, %v1863_v28, %v1287_v26  ;;  %v1203_v2 = vpop.permute.xlu1 %1202  ;;  %v1854_v39 = vsel %vm1826_vm4, %v1821_v6, %v3550_v4  ;;  %v4728_v26 = vld [vmem:[#allocation52_spill] sm:$0xff]  ;;  %v650_v4 = vld [vmem:[#allocation2 + $0xa8] sm:$0xff] }
 0x1d7   : > { %4724 = vst [vmem:[#allocation32_spill] sm:$0xff] %v3697_v5  ;;  %v3702_v17 = vsel %vm1859_vm5, %v1852_v9, %v1203_v2  ;;  %v4729_v9 = vld [vmem:[#allocation55_spill] sm:$0xff]  ;;  %v4730_v2 = vld [vmem:[#allocation53_spill] sm:$0xff] }
 0x1d8   : > { %v1207_v3 = vpop.permute.xlu0 %1206  ;;  %v1792_v36 = vsel %vm306_vm0, %v3377_v20, %v4729_v9  ;;  %v653_v20 = vld [vmem:[#allocation2 + $0xc8] sm:$0xff]  ;;  %v4734_v9 = vld [vmem:[#allocation11_spill] sm:$0xff] }
 0x1d9   : > { %v3707_v53 = vsel %vm1859_vm5, %v1854_v39, %v1207_v3  ;;  %v1825_v45 = vsel %vm1793_vm3, %v1792_v36, %v3431_v29  ;;  %v4732_v3 = vld [vmem:[#allocation57_spill] sm:$0xff] }
 0x1da   : > { %v1858_v39 = vsel %vm1826_vm4, %v1825_v45, %v3522_v63  ;;  %v4736_v29 = vld [vmem:[#allocation61_spill] sm:$0xff]  ;;  %v4737_v63 = vld [vmem:[#allocation59_spill] sm:$0xff] }
 0x1db   : > { %1422 = vrot.lane.b32.xlu2 %v647_v19, %s2680_s17 }
 0x1dc   : > { %1420 = vrot.lane.b32.xlu1 %v4726_v42, %s2680_s17  ;;  %v4753_v42 = vld [vmem:[#allocation77_spill] sm:$0xff] }
 0x1dd   : > { %v3712_v28 = vpop.permute.xlu2 %1292 }
 0x1de   : > { %4727 = vst [vmem:[#allocation41_spill] sm:$0xff] %v3712_v28  ;;  %1424 = vrot.lane.b32.xlu0 %v4728_v26, %s2680_s17  ;;  %v3716_v8 = vpop.permute.xlu1 %1208  ;;  %v4735_v28 = vld [vmem:[#allocation37_spill] sm:$0xff] }
 0x1df   : > { %v1763_v5 = vsel %vm306_vm0, %v4735_v28, %v4734_v9 }
 0x1e0   : > { %v3718_v33 = vpop.permute.xlu0 %1212  ;;  %v1796_v36 = vsel %vm1793_vm3, %v1763_v5, %v4736_v29  ;;  %v656_v5 = vld [vmem:[#allocation2 + $0xf0] sm:$0xff]  ;;  %v4741_v29 = vld [vmem:[#allocation24_spill] sm:$0xff] }
 0x1e1   : > { %v1829_v45 = vsel %vm1826_vm4, %v1796_v36, %v3443_v35  ;;  %v4742_v35 = vld [vmem:[#allocation66_spill] sm:$0xff] }
 0x1e3   : > { %1428 = vrot.lane.b32.xlu2 %v650_v4, %s2680_s17 }
 0x1e4   : > { %1426 = vrot.lane.b32.xlu1 %v4730_v2, %s2680_s17 }
 0x1e5   : > { %v3728_v6 = vpop.permute.xlu2 %1298 }
 0x1e6   : > { %4731 = vst [vmem:[#allocation42_spill] sm:$0xff] %v3728_v6  ;;  %1430 = vrot.lane.b32.xlu0 %v4732_v3, %s2680_s17  ;;  %v1215_v19 = vpop.permute.xlu1 %1214  ;;  %v4739_v6 = vld [vmem:[#allocation63_spill] sm:$0xff] }
 0x1e7   : > { %v3735_v26 = vsel %vm1859_vm5, %v1858_v39, %v1215_v19  ;;  %v1862_v19 = vsel %vm1859_vm5, %v1829_v45, %v3534_v56  ;;  %v4743_v45 = vld [vmem:[#allocation65_spill] sm:$0xff] }
 0x1e8   : > { %4733 = vst [vmem:[#allocation83_spill] sm:$0xff] %v3735_v26  ;;  %v3737_v4 = vpop.permute.xlu0 %1282  ;;  %v1776_v26 = vsel %vm306_vm0, %v4732_v3, %v4741_v29 }
 0x1e9   : > { %v1809_v36 = vsel %vm1793_vm3, %v1776_v26, %v4742_v35  ;;  %v4748_v35 = vld [vmem:[#allocation72_spill] sm:$0xff] }
 0x1ea   : > { %v1842_v56 = vsel %vm1826_vm4, %v1809_v36, %v3501_v55 }
 0x1eb   : > { %1434 = vrot.lane.b32.xlu2 %v653_v20, %s2680_s17 }
 0x1ec   : > { %1432 = vrot.lane.b32.xlu1 %v4737_v63, %s2680_s17 }
 0x1ed   : > { %v3749_v39 = vpop.permute.xlu2 %1304 }
 0x1ee   : > { %4738 = vst [vmem:[#allocation14_spill] sm:$0xff] %v3749_v39  ;;  %1436 = vrot.lane.b32.xlu0 %v4739_v6, %s2680_s17  ;;  %v1285_v28 = vpop.permute.xlu1 %1284  ;;  %v4744_v39 = vld [vmem:[#allocation69_spill] sm:$0xff] }
 0x1ef   : > { %v3756_v20 = vsel %vm1892_vm6, %v1862_v19, %v1285_v28  ;;  %v1875_v19 = vsel %vm1859_vm5, %v1842_v56, %v3624_v38  ;;  %v4749_v38 = vld [vmem:[#allocation82_spill] sm:$0xff] }
 0x1f0   : > { %4740 = vst [vmem:[#allocation36_spill] sm:$0xff] %v3756_v20  ;;  %v3758_v9 = vpop.permute.xlu0 %1288  ;;  %v688_v56 = vld [vmem:[#allocation2 + $0xf1] sm:$0xff] }
 0x1f3   : > { %1440 = vrot.lane.b32.xlu2 %v656_v5, %s2680_s17  ;;  %v4747_v5 = vld [vmem:[#allocation29_spill] sm:$0xff] }
 0x1f4   : > { %1438 = vrot.lane.b32.xlu1 %v4743_v45, %s2680_s17  ;;  %v1779_v55 = vsel %vm306_vm0, %v4739_v6, %v4747_v5 }
 0x1f5   : > { %v1311_v28 = vpop.permute.xlu2 %1310  ;;  %v1812_v36 = vsel %vm1793_vm3, %v1779_v55, %v4748_v35  ;;  %v720_v35 = vld [vmem:[#allocation2 + $0xf2] sm:$0xff] }
 0x1f6   : > { %1442 = vrot.lane.b32.xlu0 %v4744_v39, %s2680_s17  ;;  %v3775_v3 = vsel %vm1892_vm6, %v1875_v19, %v1311_v28  ;;  %v3777_v29 = vpop.permute.xlu1 %1290  ;;  %v1845_v20 = vsel %vm1826_vm4, %v1812_v36, %v3515_v58  ;;  %v4750_v19 = vld [vmem:[#allocation71_spill] sm:$0xff] }
 0x1f7   : > { %4745 = vst [vmem:[#allocation44_spill] sm:$0xff] %v3775_v3  ;;  %v1878_v28 = vsel %vm1859_vm5, %v1845_v20, %v3636_v52  ;;  %v4752_v58 = vld [vmem:[#allocation35_spill] sm:$0xff] }
 0x1f8   : > { %4746 = vst [vmem:[#allocation45_spill] sm:$0xff] %v3777_v29  ;;  %v3779_v26 = vpop.permute.xlu0 %1294  ;;  %v696_v29 = vld [vmem:[#allocation2 + $0x151] sm:$0xff]  ;;  %v1782_v36 = vsel %vm306_vm0, %v4744_v39, %v4752_v58 }
 0x1f9   : > { %v1815_v52 = vsel %vm1793_vm3, %v1782_v36, %v4753_v42  ;;  %v728_v20 = vld [vmem:[#allocation2 + $0x152] sm:$0xff] }
 0x1fa   : > { %v4755_v58 = vld [vmem:[#allocation79_spill] sm:$0xff] }
 0x1fb   : > { %1456 = vrot.lane.b32.xlu2 %v4749_v38, %s2680_s17 }
 0x1fc   : > { %1444 = vrot.lane.b32.xlu1 %v4750_v19, %s2680_s17 }
 0x1fd   : > { %v1317_v3 = vpop.permute.xlu2 %1316 }
 0x1fe   : > { %1568 = vrot.lane.b32.xlu0 %v688_v56, %s2681_s24  ;;  %v3796_v6 = vsel %vm1892_vm6, %v1878_v28, %v1317_v3  ;;  %v3798_v5 = vpop.permute.xlu1 %1296  ;;  %v1848_v3 = vsel %vm1826_vm4, %v1815_v52, %v3526_v61  ;;  %v4754_v56 = vld [vmem:[#allocation23_spill] sm:$0xff] }
 0x1ff   : > { %4751 = vst [vmem:[#allocation76_spill] sm:$0xff] %v3796_v6  ;;  %v1774_v28 = vsel %vm306_vm0, %v4730_v2, %v4754_v56  ;;  %v1881_v6 = vsel %vm1859_vm5, %v1848_v3, %v3652_v51  ;;  %v680_v52 = vld [vmem:[#allocation2 + $0x91] sm:$0xff]  ;;  %v4756_v56 = vld [vmem:[#allocation13_spill] sm:$0xff] }
 0x200   : > { %v3800_v55 = vpop.permute.xlu0 %1300  ;;  %v1807_v42 = vsel %vm1793_vm3, %v1774_v28, %v4755_v58  ;;  %v672_v3 = vld [vmem:[#allocation2 + $0x31] sm:$0xff] }
 0x201   : > { %v1840_v61 = vsel %vm1826_vm4, %v1807_v42, %v3449_v34  ;;  %v4757_v28 = vld [vmem:[#allocation58_spill] sm:$0xff]  ;;  %v4759_v34 = vld [vmem:[#allocation28_spill] sm:$0xff] }
 0x202   : > { %v1873_v2 = vsel %vm1859_vm5, %v1840_v61, %v3622_v1  ;;  %v1777_v1 = vsel %vm306_vm0, %v4737_v63, %v4759_v34  ;;  %v4762_v34 = vld [vmem:[#allocation64_spill] sm:$0xff] }
 0x203   : > { %1696 = vrot.lane.b32.xlu2 %v720_v35, %s2682_s25 }
 0x204   : > { %1584 = vrot.lane.b32.xlu1 %v696_v29, %s2681_s24 }
 0x205   : > { %v1323_v39 = vpop.permute.xlu2 %1322 }
 0x206   : > { %1712 = vrot.lane.b32.xlu0 %v728_v20, %s2682_s25  ;;  %v3820_v35 = vsel %vm1892_vm6, %v1881_v6, %v1323_v39  ;;  %v3822_v36 = vpop.permute.xlu1 %1302  ;;  %v1775_v20 = vsel %vm306_vm0, %v4757_v28, %v4756_v56  ;;  %v665_v6 = vld [vmem:[#allocation2 + $0x158] sm:$0xff]  ;;  %v4758_v39 = vld [vmem:[#allocation84_spill] sm:$0xff] }
 0x207   : > { %v1808_v58 = vsel %vm1793_vm3, %v1775_v20, %v4758_v39  ;;  %v712_v39 = vld [vmem:[#allocation2 + $0x92] sm:$0xff] }
 0x208   : > { %v1307_v29 = vpop.permute.xlu0 %1306  ;;  %v1841_v42 = vsel %vm1826_vm4, %v1808_v58, %v3491_v54  ;;  %v4761_v58 = vld [vmem:[#allocation16_spill] sm:$0xff] }
 0x209   : > { %v3829_v51 = vsel %vm1892_vm6, %v1873_v2, %v1307_v29  ;;  %v4760_v2 = vld [vmem:[#allocation85_spill] sm:$0xff] }
 0x20a   : > { %v1810_v29 = vsel %vm1793_vm3, %v1777_v1, %v4760_v2  ;;  %v689_v1 = vld [vmem:[#allocation2 + $0xf9] sm:$0xff] }
 0x20b   : > { %1552 = vrot.lane.b32.xlu2 %v680_v52, %s2681_s24  ;;  %v1874_v52 = vsel %vm1859_vm5, %v1841_v42, %v3582_v16  ;;  %v1843_v63 = vsel %vm1826_vm4, %v1810_v29, %v3461_v40  ;;  %v4763_v42 = vld [vmem:[#allocation34_spill] sm:$0xff]  ;;  %v4764_v29 = vld [vmem:[#allocation89_spill] sm:$0xff] }
 0x20c   : > { %1536 = vrot.lane.b32.xlu1 %v672_v3, %s2681_s24  ;;  %v1876_v54 = vsel %vm1859_vm5, %v1843_v63, %v3634_v15  ;;  %v1780_v15 = vsel %vm306_vm0, %v4743_v45, %v4763_v42 }
 0x20d   : > { %v1329_v61 = vpop.permute.xlu2 %1328 }
 0x20e   : > { %1458 = vrot.lane.b32.xlu0 %v665_v6, %s2680_s17  ;;  %v3850_v56 = vsel %vm1892_vm6, %v3670_v30, %v1329_v61  ;;  %v1309_v3 = vpop.permute.xlu1 %1308  ;;  %v704_v6 = vld [vmem:[#allocation2 + $0x32] sm:$0xff]  ;;  %v1778_v30 = vsel %vm306_vm0, %v4762_v34, %v4761_v58 }
 0x20f   : > { %v3855_v28 = vsel %vm1892_vm6, %v1874_v52, %v1309_v3  ;;  %v1811_v40 = vsel %vm1793_vm3, %v1778_v30, %v3383_v13  ;;  %v1813_v52 = vsel %vm1793_vm3, %v1780_v15, %v4764_v29  ;;  %v4765_v58 = vld [vmem:[#allocation51_spill] sm:$0xff]  ;;  %v4766_v34 = vld [vmem:[#allocation86_spill] sm:$0xff] }
 0x210   : > { %v1313_v20 = vpop.permute.xlu0 %1312  ;;  %v1844_v61 = vsel %vm1826_vm4, %v1811_v40, %v3503_v57  ;;  %v1846_v45 = vsel %vm1826_vm4, %v1813_v52, %v3473_v46  ;;  %v4767_v30 = vld [vmem:[#allocation19_spill] sm:$0xff] }
 0x211   : > { %v3860_v16 = vsel %vm1892_vm6, %v1876_v54, %v1313_v20  ;;  %v1877_v3 = vsel %vm1859_vm5, %v1844_v61, %v3594_v25  ;;  %v1879_v57 = vsel %vm1859_vm5, %v1846_v45, %v3650_v22  ;;  %v729_v22 = vld [vmem:[#allocation2 + $0x15a] sm:$0xff] }
 0x212   : > { %v4769_v61 = vld [vmem:[#allocation40_spill] sm:$0xff] }
 0x213   : > { %1680 = vrot.lane.b32.xlu2 %v712_v39, %s2682_s25  ;;  %v721_v39 = vld [vmem:[#allocation2 + $0xfa] sm:$0xff] }
 0x214   : > { %1664 = vrot.lane.b32.xlu1 %v704_v6, %s2682_s25  ;;  %v697_v6 = vld [vmem:[#allocation2 + $0x159] sm:$0xff] }
 0x215   : > { %v1335_v2 = vpop.permute.xlu2 %1334 }
 0x216   : > { %1570 = vrot.lane.b32.xlu0 %v689_v1, %s2681_s24  ;;  %v3881_v13 = vsel %vm1892_vm6, %v3707_v53, %v1335_v2  ;;  %v1315_v63 = vpop.permute.xlu1 %1314  ;;  %v1791_v53 = vsel %vm306_vm0, %v4766_v34, %v4765_v58  ;;  %v4768_v1 = vld [vmem:[#allocation70_spill] sm:$0xff]  ;;  %v1783_v2 = vsel %vm306_vm0, %v4750_v19, %v4769_v61  ;;  %v4771_v58 = vld [vmem:[#allocation56_spill] sm:$0xff] }
 0x217   : > { %v3886_v54 = vsel %vm1892_vm6, %v1877_v3, %v1315_v63  ;;  %v1781_v46 = vsel %vm306_vm0, %v4768_v1, %v4767_v30  ;;  %v1824_v40 = vsel %vm1793_vm3, %v1791_v53, %v3389_v32  ;;  %v447_v3 = vld [vmem:[#allocation2 + $0x8] sm:$0xff]  ;;  %v4772_v30 = vld [vmem:[#allocation22_spill] sm:$0xff] }
 0x218   : > { %v1319_v20 = vpop.permute.xlu0 %1318  ;;  %v1814_v42 = vsel %vm1793_vm3, %v1781_v46, %v3393_v0  ;;  %v1857_v15 = vsel %vm1826_vm4, %v1824_v40, %v3562_v7  ;;  %v1816_v0 = vsel %vm1793_vm3, %v1783_v2, %v3395_v44  ;;  %v681_v44 = vld [vmem:[#allocation2 + $0x99] sm:$0xff] }
 0x219   : > { %v3891_v25 = vsel %vm1892_vm6, %v1879_v57, %v1319_v20  ;;  %v1847_v29 = vsel %vm1826_vm4, %v1814_v42, %v3517_v59  ;;  %v1890_v32 = vsel %vm1859_vm5, %v1857_v15, %v3718_v33  ;;  %v1849_v59 = vsel %vm1826_vm4, %v1816_v0, %v3485_v50  ;;  %v4770_v20 = vld [vmem:[#allocation12_spill] sm:$0xff]  ;;  %v4773_v50 = vld [vmem:[#allocation75_spill] sm:$0xff] }
 0x21a   : > { %v1880_v7 = vsel %vm1859_vm5, %v1847_v29, %v3606_v37  ;;  %v1882_v33 = vsel %vm1859_vm5, %v1849_v59, %v3663_v41  ;;  %v1762_v37 = vsel %vm306_vm0, %v447_v3, %v4770_v20  ;;  %v1784_v1 = vsel %vm306_vm0, %v4773_v50, %v4772_v30  ;;  %v713_v29 = vld [vmem:[#allocation2 + $0x9a] sm:$0xff]  ;;  %v4776_v3 = vld [vmem:[#allocation62_spill] sm:$0xff]  ;;  %v4780_v50 = vld [vmem:[#allocation17_spill] sm:$0xff] }
 0x21b   : > { %1698 = vrot.lane.b32.xlu2 %v721_v39, %s2682_s25  ;;  %v1795_v53 = vsel %vm1793_vm3, %v1762_v37, %v4771_v58  ;;  %v1817_v41 = vsel %vm1793_vm3, %v1784_v1, %v3405_v43  ;;  %v4777_v0 = vld [vmem:[#allocation27_spill] sm:$0xff] }
 0x21c   : > { %1586 = vrot.lane.b32.xlu1 %v697_v6, %s2681_s24  ;;  %v673_v6 = vld [vmem:[#allocation2 + $0x39] sm:$0xff]  ;;  %v1828_v46 = vsel %vm1826_vm4, %v1795_v53, %v3401_v31 }
 0x21d   : > { %v1341_v52 = vpop.permute.xlu2 %1340  ;;  %v1861_v40 = vsel %vm1859_vm5, %v1828_v46, %v3574_v11  ;;  %v698_v46 = vld [vmem:[#allocation2 + $0x169] sm:$0xff] }
 0x21e   : > { %1714 = vrot.lane.b32.xlu0 %v729_v22, %s2682_s25  ;;  %v3920_v63 = vsel %vm1892_vm6, %v1890_v32, %v1341_v52  ;;  %v1321_v19 = vpop.permute.xlu1 %1320  ;;  %v1850_v22 = vsel %vm1826_vm4, %v1817_v41, %v3528_v47  ;;  %v1894_v42 = vsel %vm1892_vm6, %v1861_v40, %v3737_v4  ;;  %v4774_v47 = vld [vmem:[#allocation6_spill] sm:$0xff]  ;;  %v4781_v41 = vld [vmem:[#allocation68_spill] sm:$0xff] }
 0x21f   : > { %v3925_v45 = vsel %vm1892_vm6, %v1880_v7, %v1321_v19  ;;  %v1883_v31 = vsel %vm1859_vm5, %v1850_v22, %v3618_v49  ;;  %v4775_v32 = vld [vmem:[#allocation38_spill] sm:$0xff]  ;;  %v705_v49 = vld [vmem:[#allocation2 + $0x3a] sm:$0xff]  ;;  %v4778_v7 = vld [vmem:[#allocation81_spill] sm:$0xff] }
 0x220   : > { %v1325_v57 = vpop.permute.xlu0 %1324  ;;  %v1765_v4 = vsel %vm306_vm0, %v4775_v32, %v4774_v47  ;;  %v1787_v19 = vsel %vm306_vm0, %v4778_v7, %v4777_v0  ;;  %v4782_v22 = vld [vmem:[#allocation33_spill] sm:$0xff]  ;;  %v446_v7 = vld [vmem:[#allocation2] sm:$0xff] }
 0x221   : > { %v3932_v39 = vsel %vm1892_vm6, %v1882_v33, %v1325_v57  ;;  %v690_v33 = vld [vmem:[#allocation2 + $0x109] sm:$0xff]  ;;  %v1820_v57 = vsel %vm1793_vm3, %v1787_v19, %v3417_v12 }
 0x222   : > { %v1853_v37 = vsel %vm1826_vm4, %v1820_v57, %v3540_v48 }
 0x223   : > { %1554 = vrot.lane.b32.xlu2 %v681_v44, %s2681_s24  ;;  %v4779_v44 = vld [vmem:[#allocation50_spill] sm:$0xff]  ;;  %v1886_v12 = vsel %vm1859_vm5, %v1853_v37, %v3630_v62  ;;  %v1768_v62 = vsel %vm306_vm0, %v4720_v10, %v4780_v50  ;;  %v419_v10 = vld [vmem:[%s4550_s1 + $0x4] sm:$0xf]  ;;  %v4787_v37 = vld [vmem:[#allocation20_spill] sm:$0xff] }
 0x224   : > { %1538 = vrot.lane.b32.xlu1 %v673_v6, %s2681_s24  ;;  %v1789_v20 = vsel %vm306_vm0, %v4749_v38, %v4779_v44  ;;  %v1801_v40 = vsel %vm1793_vm3, %v1768_v62, %v4781_v41  ;;  %v4786_v44 = vld [vmem:[#allocation9_spill] sm:$0xff]  ;;  %v426_v50 = vld [vmem:[%s4550_s1 + $0x20] sm:$0xf]  ;;  %v4792_v62 = vld [vmem:[#allocation90_spill] sm:$0xff] }
 0x225   : > { %v1411_v15 = vpop.permute.xlu2 %1410  ;;  %v1822_v58 = vsel %vm1793_vm3, %v1789_v20, %v3419_v23  ;;  %v722_v23 = vld [vmem:[#allocation2 + $0x10a] sm:$0xff]  ;;  %v1761_v20 = vsel %vm306_vm0, %v446_v7, %v4786_v44  ;;  %v4793_v41 = vld [vmem:[#allocation91_spill] sm:$0xff] }
 0x226   : > { %1460 = vrot.lane.b32.xlu0 %v4766_v34, %s2680_s17  ;;  %v3956_v43 = vsel %vm1925_vm7, %v1894_v42, %v1411_v15  ;;  %v1327_v61 = vpop.permute.xlu1 %1326  ;;  %v1798_v34 = vsel %vm1793_vm3, %v1765_v4, %v4776_v3  ;;  %v1855_v38 = vsel %vm1826_vm4, %v1822_v58, %v3511_v60  ;;  %v4014_v60 = vld [vmem:[%s4551_s2] sm:$0xf]  ;;  %v423_v7 = vld [vmem:[%s4550_s1 + $0x14] sm:$0xf] }
 0x227   : > { %v3959_v11 = vsel %vm1892_vm6, %v1883_v31, %v1327_v61  ;;  %v1831_v59 = vsel %vm1826_vm4, %v1798_v34, %v3413_v14  ;;  %v4783_v42 = vld [vmem:[#allocation87_spill] sm:$0xff]  ;;  %v1834_v31 = vsel %vm1826_vm4, %v1801_v40, %v3425_v21  ;;  %v730_v61 = vld [vmem:[#allocation2 + $0x16a] sm:$0xff]  ;;  %v4784_v21 = vld [vmem:[#allocation100_spill] sm:$0xff] }
 0x228   : > { %v1331_v2 = vpop.permute.xlu0 %1330  ;;  %v1790_v15 = vsel %vm306_vm0, %v4783_v42, %v4782_v22  ;;  %v1867_v32 = vsel %vm1859_vm5, %v1834_v31, %v3598_v27  ;;  %v4038_v4 = vld [vmem:[%s4552_s3] sm:$0xf]  ;;  %v4785_v27 = vld [vmem:[#allocation26_spill] sm:$0xff] }
 0x229   : > { %v3966_v52 = vsel %vm1892_vm6, %v3702_v17, %v1331_v2  ;;  %v1864_v17 = vsel %vm1859_vm5, %v1831_v59, %v3586_v18  ;;  %v1823_v47 = vsel %vm1793_vm3, %v1790_v15, %v3429_v24  ;;  %v1900_v3 = vsel %vm1892_vm6, %v1867_v32, %v3779_v26  ;;  %v4789_v58 = vld [vmem:[#allocation83_spill] sm:$0xff]  ;;  %v4794_v22 = vld [vmem:[#allocation102_spill] sm:$0xff] }
 0x22a   : > { %v1897_v14 = vsel %vm1892_vm6, %v1864_v17, %v3758_v9  ;;  %v1888_v9 = vsel %vm1859_vm5, %v1855_v38, %v3716_v8  ;;  %v418_v8 = vld [vmem:[%s4550_s1] sm:$0xf]  ;;  %v682_v17 = vld [vmem:[#allocation2 + $0xa9] sm:$0xff] }
 0x22b   : > { %1682 = vrot.lane.b32.xlu2 %v713_v29, %s2682_s25  ;;  %v427_v2 = vmul.f32 %v418_v8, %v4014_v60  ;;  %v428_v29 = vmul.f32 %v419_v10, %v4014_v60  ;;  %v4790_v38 = vld [vmem:[#allocation39_spill] sm:$0xff]  ;;  %v659_v8 = vld [vmem:[#allocation2 + $0x110] sm:$0xff]  ;;  %v435_v10 = vmul.f32 %v426_v50, %v4014_v60 }
 0x22c   : > { %1666 = vrot.lane.b32.xlu1 %v705_v49, %s2682_s25  ;;  %v1856_v49 = vsel %vm1826_vm4, %v1823_v47, %v4784_v21  ;;  %v4795_v15 = vld [vmem:[#allocation106_spill] sm:$0xff] }
 0x22d   : > { %v1417_v6 = vpop.permute.xlu2 %1416  ;;  %v437_v0 = vadd.f32 %v4038_v4, %v427_v2  ;;  %v438_v24 = vadd.f32 %v4038_v4, %v428_v29  ;;  %v1889_v19 = vsel %vm1859_vm5, %v1856_v49, %v4785_v27  ;;  %v425_v2 = vld [vmem:[%s4550_s1 + $0x1c] sm:$0xf]  ;;  %v445_v32 = vadd.f32 %v4038_v4, %v435_v10 }
 0x22e   : > { %1572 = vrot.lane.b32.xlu0 %v690_v33, %s2681_s24  ;;  %v3994_v18 = vsel %vm1925_vm7, %v1897_v14, %v1417_v6  ;;  %v1333_v53 = vpop.permute.xlu1 %1332  ;;  %v4788_v14 = vld [vmem:[#allocation48_spill] sm:$0xff]  ;;  %v434_v49 = vmul.f32 %v425_v2, %v4014_v60  ;;  %v4801_v2 = vld [vmem:[#allocation99_spill] sm:$0xff] }
 0x22f   : > { %v3999_v48 = vsel %vm1892_vm6, %v1886_v12, %v1333_v53  ;;  %2037 = vst [vmem:[#allocation1] ss:$2 sm:$0xff] %v437_v0  ;;  %v1771_v6 = vsel %vm306_vm0, %v4788_v14, %v4787_v37  ;;  %v674_v53 = vld [vmem:[#allocation2 + $0x49] sm:$0xff]  ;;  %v432_v37 = vmul.f32 %v423_v7, %v4014_v60  ;;  %v420_v14 = vld [vmem:[%s4550_s1 + $0x8] sm:$0xf] }
 0x230   : > { %v1337_v30 = vpop.permute.xlu0 %1336  ;;  %2039 = vst [vmem:[#allocation1 + $0x1] ss:$2 sm:$0xff] %v438_v24 }
 0x231   : > { %v4007_v1 = vsel %vm1892_vm6, %v1888_v9, %v1337_v30  ;;  %v1794_v9 = vsel %vm1793_vm3, %v1761_v20, %v4790_v38  ;;  %v4791_v30 = vld [vmem:[#allocation74_spill] sm:$0xff]  ;;  %v442_v50 = vadd.f32 %v4038_v4, %v432_v37 }
 0x232   : > { %v1827_v40 = vsel %vm1826_vm4, %v1794_v9, %v4793_v41  ;;  %v667_v38 = vld [vmem:[#allocation2 + $0x170] sm:$0xff] }
 0x233   : > { %1700 = vrot.lane.b32.xlu2 %v722_v23, %s2682_s25  ;;  %v1804_v23 = vsel %vm1793_vm3, %v1771_v6, %v4791_v30  ;;  %v1860_v42 = vsel %vm1859_vm5, %v1827_v40, %v4794_v22  ;;  %v421_v6 = vld [vmem:[%s4550_s1 + $0xc] sm:$0xf]  ;;  %v429_v30 = vmul.f32 %v420_v14, %v4014_v60  ;;  %v2586_v40 = vld [vmem:[#allocation2 + $0x38] sm:$0xff]  ;;  %2047 = vst [vmem:[#allocation1 + $0x21] ss:$2 sm:$0xff] %v442_v50  ;;  %v4808_v50 = vld [vmem:[#allocation41_spill] sm:$0xff] }
 0x234   : > { %1588 = vrot.lane.b32.xlu1 %v698_v46, %s2681_s24  ;;  %v1837_v46 = vsel %vm1826_vm4, %v1804_v23, %v4792_v62  ;;  %v430_v23 = vmul.f32 %v421_v6, %v4014_v60  ;;  %v714_v62 = vld [vmem:[#allocation2 + $0xaa] sm:$0xff]  ;;  %v4799_v22 = vld [vmem:[#allocation67_spill] sm:$0xff] }
 0x235   : > { %v1423_v34 = vpop.permute.xlu2 %1422  ;;  %v1870_v31 = vsel %vm1859_vm5, %v1837_v46, %v4795_v15  ;;  %v439_v46 = vadd.f32 %v4038_v4, %v429_v30  ;;  %v4800_v15 = vld [vmem:[#allocation92_spill] sm:$0xff]  ;;  %v723_v37 = vld [vmem:[#allocation2 + $0x112] sm:$0xff]  ;;  %v4806_v6 = vld [vmem:[#allocation93_spill] sm:$0xff] }
 0x236   : > { %1716 = vrot.lane.b32.xlu0 %v730_v61, %s2682_s25  ;;  %v4050_v59 = vsel %vm1925_vm7, %v1900_v3, %v1423_v34  ;;  %v1339_v33 = vpop.permute.xlu1 %1338  ;;  %v424_v61 = vld [vmem:[%s4550_s1 + $0x18] sm:$0xf]  ;;  %v1903_v29 = vsel %vm1892_vm6, %v1870_v31, %v3800_v55  ;;  %v422_v55 = vld [vmem:[%s4550_s1 + $0x10] sm:$0xf]  ;;  %v440_v41 = vadd.f32 %v4038_v4, %v430_v23 }
 0x237   : > { %v4053_v57 = vsel %vm1892_vm6, %v1889_v19, %v1339_v33  ;;  %v433_v21 = vmul.f32 %v424_v61, %v4014_v60  ;;  %v4796_v3 = vld [vmem:[#allocation30_spill] sm:$0xff]  ;;  %v4108_v33 = vld.sshfl [vmem:[#allocation1] sm:$0xff pattern:$0x75316420]  ;;  %v431_v44 = vmul.f32 %v422_v55, %v4014_v60  ;;  %2041 = vst [vmem:[#allocation1 + $0x10] ss:$2 sm:$0xff] %v439_v46 }
 0x238   : > { %v1343_v26 = vpop.permute.xlu0 %1342  ;;  %v1893_v34 = vsel %vm1892_vm6, %v1860_v42, %v4796_v3  ;;  %v706_v19 = vld [vmem:[#allocation2 + $0x4a] sm:$0xff]  ;;  %2056 = vst [vmem:[#allocation1] ss:$2 sm:$0xff] %v445_v32 }
 0x239   : > { %v4062_v12 = vsel %vm1892_vm6, %v4789_v58, %v1343_v26  ;;  %v443_v26 = vadd.f32 %v4038_v4, %v433_v21  ;;  %v4797_v58 = vld [vmem:[#allocation36_spill] sm:$0xff]  ;;  %v441_v9 = vadd.f32 %v4038_v4, %v431_v44  ;;  %2043 = vst [vmem:[#allocation1 + $0x11] ss:$2 sm:$0xff] %v440_v41  ;;  %v691_v55 = vld [vmem:[#allocation2 + $0x111] sm:$0xff]  ;;  %v4805_v44 = vld [vmem:[#allocation49_spill] sm:$0xff] }
 0x23b   : > { %1556 = vrot.lane.b32.xlu2 %v682_v17, %s2681_s24  ;;  %v444_v17 = vadd.f32 %v4038_v4, %v434_v49  ;;  %2049 = vst [vmem:[#allocation1 + $0x30] ss:$2 sm:$0xff] %v443_v26  ;;  %v4803_v49 = vld [vmem:[#allocation45_spill] sm:$0xff]  ;;  %v4804_v26 = vld [vmem:[#allocation15_spill] sm:$0xff] }
 0x23c   : > { %1540 = vrot.lane.b32.xlu1 %v674_v53, %s2681_s24  ;;  %2045 = vst [vmem:[#allocation1 + $0x20] ss:$2 sm:$0xff] %v441_v9 }
 0x23d   : > { %v1429_v47 = vpop.permute.xlu2 %1428  ;;  %2051 = vst [vmem:[#allocation1 + $0x31] ss:$2 sm:$0xff] %v444_v17 }
 0x23e   : > { %1446 = vrot.lane.b32.xlu0 %v659_v8, %s2680_s17  ;;  %v4097_v0 = vsel %vm1925_vm7, %v1903_v29, %v1429_v47  ;;  %v1409_v24 = vpop.permute.xlu1 %1408  ;;  %v4798_v8 = vld [vmem:[#allocation7_spill] sm:$0xff]  ;;  %v4802_v47 = vld [vmem:[#allocation32_spill] sm:$0xff] }
 0x23f   : > { %v4106_v27 = vsel %vm1925_vm7, %v1893_v34, %v1409_v24  ;;  %v1766_v10 = vsel %vm306_vm0, %v2586_v40, %v4798_v8  ;;  %v2057_v21 = vld.sshfl [vmem:[#allocation1] sm:$0xff pattern:$0x75316420] }
 0x240   : > { %v1413_v20 = vpop.permute.xlu0 %1412  ;;  %v1799_v60 = vsel %vm1793_vm3, %v1766_v10, %v4799_v22  ;;  %v699_v24 = vld [vmem:[#allocation2 + $0x171] sm:$0xff]  ;;  %2505 = vmatpush.msk.msra.mxu1 %vm2159_vm8, %v2057_v21  ;;  %2506 = vmatpush.msk.msra.mxu2 %vm2159_vm8, %v2057_v21  ;;  %v2053_v23 = vld.sshfl [vmem:[#allocation1 + $0x10] sm:$0xff pattern:$0x75316420] }
 0x241   : > { %v4122_v53 = vsel %vm1925_vm7, %v4797_v58, %v1413_v20  ;;  %v1832_v31 = vsel %vm1826_vm4, %v1799_v60, %v4800_v15  ;;  %2507 = vmatpush.msk.msra.mxu3 %vm2159_vm8, %v2057_v21  ;;  %2465 = vmatpush.msk.msra.mxu0 %vm2159_vm8, %v2057_v21  ;;  %v675_v8 = vld [vmem:[#allocation2 + $0x51] sm:$0xff]  ;;  %v2588_v60 = vld [vmem:[#allocation2 + $0x80] sm:$0xff] }
 0x242   : > { %v1865_v29 = vsel %vm1859_vm5, %v1832_v31, %v4801_v2  ;;  %v731_v10 = vld [vmem:[#allocation2 + $0x172] sm:$0xff] }
 0x243   : > { %1668 = vrot.lane.b32.xlu2 %v706_v19, %s2682_s25  ;;  %v1898_v3 = vsel %vm1892_vm6, %v1865_v29, %v4803_v49  ;;  %v2587_v19 = vld [vmem:[#allocation2 + $0x48] sm:$0xff]  ;;  %v2054_v14 = vld.sshfl [vmem:[#allocation1 + $0x20] sm:$0xff pattern:$0x75316420]  ;;  %v4810_v31 = vld [vmem:[#allocation78_spill] sm:$0xff] }
 0x244   : > { %1462 = vrot.lane.b32.xlu1 %v667_v38, %s2680_s17  ;;  %v2055_v7 = vld.sshfl [vmem:[#allocation1 + $0x30] sm:$0xff pattern:$0x75316420]  ;;  %v1767_v17 = vsel %vm306_vm0, %v2587_v19, %v4804_v26  ;;  %v4807_v38 = vld [vmem:[#allocation104_spill] sm:$0xff]  ;;  %v683_v22 = vld [vmem:[#allocation2 + $0xb1] sm:$0xff] }
 0x245   : > { %v1435_v42 = vpop.permute.xlu2 %1434  ;;  %2508 = vmatpush.msra.mxu1 %v2055_v7  ;;  %2509 = vmatpush.msra.mxu2 %v2055_v7  ;;  %v1800_v20 = vsel %vm1793_vm3, %v1767_v17, %v4805_v44  ;;  %v4811_v29 = vld [vmem:[#allocation96_spill] sm:$0xff]  ;;  %v4812_v49 = vld [vmem:[#allocation103_spill] sm:$0xff]  ;;  %v2589_v19 = vld [vmem:[#allocation2 + $0x90] sm:$0xff] }
 0x246   : > { %1684 = vrot.lane.b32.xlu0 %v714_v62, %s2682_s25  ;;  %v4141_v4 = vsel %vm1925_vm7, %v3829_v51, %v1435_v42  ;;  %v1415_v61 = vpop.permute.xlu1 %1414  ;;  %2510 = vmatpush.msra.mxu3 %v2055_v7  ;;  %v1833_v58 = vsel %vm1826_vm4, %v1800_v20, %v4806_v6  ;;  %v4809_v42 = vld [vmem:[#allocation10_spill] sm:$0xff]  ;;  %v4813_v26 = vld [vmem:[#allocation21_spill] sm:$0xff]  ;;  %v4814_v44 = vld [vmem:[#allocation60_spill] sm:$0xff] }
 0x247   : > { %v4147_v32 = vsel %vm1925_vm7, %v4802_v47, %v1415_v61  ;;  %2511 = vmatpush.msra.mxu1 %v2054_v14  ;;  %v1866_v9 = vsel %vm1859_vm5, %v1833_v58, %v4807_v38  ;;  %2512 = vmatpush.msra.mxu2 %v2054_v14  ;;  %v1772_v15 = vsel %vm306_vm0, %v2588_v60, %v4809_v42  ;;  %v4818_v42 = vld [vmem:[#allocation98_spill] sm:$0xff] }
 0x248   : > { %v1419_v34 = vpop.permute.xlu0 %1418  ;;  %2513 = vmatpush.msra.mxu3 %v2054_v14  ;;  %v1899_v62 = vsel %vm1892_vm6, %v1866_v9, %v4808_v50  ;;  %2174 = vmatpush.msra.mxu0 %v2055_v7  ;;  %v1805_v61 = vsel %vm1793_vm3, %v1772_v15, %v4810_v31  ;;  %v660_v7 = vld [vmem:[#allocation2 + $0x120] sm:$0xff]  ;;  %v1773_v17 = vsel %vm306_vm0, %v2589_v19, %v4813_v26  ;;  %v4817_v9 = vld [vmem:[#allocation14_spill] sm:$0xff]  ;;  %v4823_v26 = vld [vmem:[#allocation101_spill] sm:$0xff] }
 0x249   : > { %v4152_v51 = vsel %vm1925_vm7, %v1898_v3, %v1419_v34  ;;  %2514 = vmatpush.msra.mxu1 %v2053_v23  ;;  %2515 = vmatpush.msra.mxu2 %v2053_v23  ;;  %v1838_v47 = vsel %vm1826_vm4, %v1805_v61, %v4811_v29  ;;  %v1806_v20 = vsel %vm1793_vm3, %v1773_v17, %v4814_v44  ;;  %v2591_v31 = vld [vmem:[#allocation2 + $0x60] sm:$0xff] }
 0x24a   : > { %2516 = vmatpush.msra.mxu3 %v2053_v23  ;;  %2175 = vmatpush.msra.mxu0 %v2054_v14  ;;  %v1871_v3 = vsel %vm1859_vm5, %v1838_v47, %v4812_v49  ;;  %v4815_v14 = vld [vmem:[#allocation97_spill] sm:$0xff]  ;;  %v4819_v61 = vld [vmem:[#allocation8_spill] sm:$0xff] }
 0x24b   : > { %1590 = vrot.lane.b32.xlu2 %v699_v24, %s2681_s24  ;;  %2517 = vmatpush.msra.mxu1 %v4108_v33  ;;  %v1904_v34 = vsel %vm1892_vm6, %v1871_v3, %v3822_v36  ;;  %v1839_v6 = vsel %vm1826_vm4, %v1806_v20, %v4815_v14  ;;  %v4816_v36 = vld [vmem:[#allocation107_spill] sm:$0xff]  ;;  %v1769_v29 = vsel %vm306_vm0, %v2591_v31, %v4819_v61  ;;  %v4820_v47 = vld [vmem:[#allocation44_spill] sm:$0xff]  ;;  %v4824_v20 = vld [vmem:[#allocation25_spill] sm:$0xff] }
 0x24c   : > { %1574 = vrot.lane.b32.xlu1 %v691_v55, %s2681_s24  ;;  %2518 = vmatpush.msra.mxu2 %v4108_v33  ;;  %v1872_v58 = vsel %vm1859_vm5, %v1839_v6, %v4816_v36  ;;  %v724_v19 = vld [vmem:[#allocation2 + $0x122] sm:$0xff] }
 0x24d   : > { %v4164_v30 = vpop.permute.xlu2 %1440  ;;  %2519 = vmatpush.msra.mxu3 %v4108_v33  ;;  %2176 = vmatpush.msra.mxu0 %v2053_v23  ;;  %v1905_v23 = vsel %vm1892_vm6, %v1872_v58, %v4817_v9  ;;  %v708_v31 = vld [vmem:[#allocation2 + $0x62] sm:$0xff] }
 0x24e   : > { %1702 = vrot.lane.b32.xlu0 %v723_v37, %s2682_s25  ;;  %v1421_v46 = vpop.permute.xlu1 %1420  ;;  %v2590_v37 = vld [vmem:[#allocation2 + $0x180] sm:$0xff]  ;;  %v693_v61 = vld [vmem:[#allocation2 + $0x129] sm:$0xff] }
 0x24f   : > { %v4170_v41 = vsel %vm1925_vm7, %v1899_v62, %v1421_v46  ;;  %2177 = vmatpush.msra.mxu0 %v4108_v33  ;;  %v707_v33 = vld [vmem:[#allocation2 + $0x52] sm:$0xff] }
 0x250   : > { %v1425_v40 = vpop.permute.xlu0 %1424 }
 0x253   : > { %1542 = vrot.lane.b32.xlu2 %v675_v8, %s2681_s24  ;;  %v692_v8 = vld [vmem:[#allocation2 + $0x121] sm:$0xff] }
 0x254   : > { %1718 = vrot.lane.b32.xlu1 %v731_v10, %s2682_s25 }
 0x255   : > { %v4181_v2 = vpop.permute.xlu2 %1456 }
 0x256   : > { %1558 = vrot.lane.b32.xlu0 %v683_v22, %s2681_s24  ;;  %v4186_v21 = vpop.permute.xlu1 %1426  ;;  %v715_v22 = vld [vmem:[#allocation2 + $0xb2] sm:$0xff] }
 0x258   : > { %v1431_v24 = vpop.permute.xlu0 %1430 }
 0x259   : > { %v4194_v55 = vsel %vm1925_vm7, %v1904_v34, %v1431_v24  ;;  %v4822_v24 = vld [vmem:[#allocation94_spill] sm:$0xff] }
 0x25b   : > { %1464 = vrot.lane.b32.xlu2 %v2590_v37, %s2680_s17  ;;  %v676_v37 = vld [vmem:[#allocation2 + $0x61] sm:$0xff] }
 0x25c   : > { %1448 = vrot.lane.b32.xlu1 %v660_v7, %s2680_s17 }
 0x25d   : > { %v1697_v38 = vpop.permute.xlu2 %1696 }
 0x25e   : > { %1670 = vrot.lane.b32.xlu0 %v707_v33, %s2682_s25  ;;  %v1433_v50 = vpop.permute.xlu1 %1432 }
 0x25f   : > { %v4210_v62 = vsel %vm1925_vm7, %v1905_v23, %v1433_v50  ;;  %v684_v50 = vld [vmem:[#allocation2 + $0xc1] sm:$0xff] }
 0x260   : > { %v1437_v46 = vpop.permute.xlu0 %1436 }
 0x261   : > { %v4214_v10 = vsel %vm1925_vm7, %v3855_v28, %v1437_v46  ;;  %v4821_v28 = vld [vmem:[#allocation73_spill] sm:$0xff] }
 0x262   : > { %v1802_v3 = vsel %vm1793_vm3, %v1769_v29, %v4821_v28 }
 0x263   : > { %1576 = vrot.lane.b32.xlu2 %v692_v8, %s2681_s24  ;;  %v1835_v7 = vsel %vm1826_vm4, %v1802_v3, %v4822_v24  ;;  %v669_v8 = vld [vmem:[#allocation2 + $0x188] sm:$0xff]  ;;  %v4826_v3 = vld [vmem:[#allocation54_spill] sm:$0xff] }
 0x264   : > { %1686 = vrot.lane.b32.xlu1 %v715_v22, %s2682_s25  ;;  %v1868_v17 = vsel %vm1859_vm5, %v1835_v7, %v4823_v26  ;;  %v4827_v26 = vld [vmem:[#allocation95_spill] sm:$0xff] }
 0x265   : > { %v1553_v60 = vpop.permute.xlu2 %1552  ;;  %v1901_v44 = vsel %vm1892_vm6, %v1868_v17, %v3798_v5  ;;  %v1942_v5 = vsel %vm1925_vm7, %v3860_v16, %v4164_v30 }
 0x266   : > { %1592 = vrot.lane.b32.xlu0 %v4818_v42, %s2681_s24  ;;  %v1439_v15 = vpop.permute.xlu1 %1438  ;;  %v1934_v33 = vsel %vm1925_vm7, %v1901_v44, %v1425_v40  ;;  %v661_v40 = vld [vmem:[#allocation2 + $0x128] sm:$0xff] }
 0x267   : > { %v4224_v49 = vsel %vm1925_vm7, %v4820_v47, %v1439_v15  ;;  %v1967_v14 = vsel %vm1958_vm9, %v1934_v33, %v1553_v60  ;;  %v1950_v60 = vsel %vm1925_vm7, %v3850_v56, %v4181_v2  ;;  %v716_v15 = vld [vmem:[#allocation2 + $0xc2] sm:$0xff]  ;;  %v4825_v47 = vld [vmem:[#allocation18_spill] sm:$0xff] }
 0x268   : > { %v4228_v34 = vpop.permute.xlu0 %1442  ;;  %v2592_v2 = vld [vmem:[#allocation2 + $0x68] sm:$0xff] }
 0x269   : > { %v1770_v28 = vsel %vm306_vm0, %v2592_v2, %v4825_v47  ;;  %v4828_v44 = vld [vmem:[#allocation105_spill] sm:$0xff] }
 0x26a   : > { %v1803_v24 = vsel %vm1793_vm3, %v1770_v28, %v4826_v3  ;;  %v702_v28 = vld [vmem:[#allocation2 + $0x199] sm:$0xff] }
 0x26b   : > { %1720 = vrot.lane.b32.xlu2 %v4824_v20, %s2682_s25  ;;  %v1836_v17 = vsel %vm1826_vm4, %v1803_v24, %v4827_v26  ;;  %v694_v3 = vld [vmem:[#allocation2 + $0x139] sm:$0xff] }
 0x26c   : > { %1704 = vrot.lane.b32.xlu1 %v724_v19, %s2682_s25  ;;  %v725_v19 = vld [vmem:[#allocation2 + $0x12a] sm:$0xff]  ;;  %v1869_v20 = vsel %vm1859_vm5, %v1836_v17, %v4828_v44  ;;  %v726_v24 = vld [vmem:[#allocation2 + $0x13a] sm:$0xff] }
 0x26d   : > { %v1681_v6 = vpop.permute.xlu2 %1680  ;;  %v4831_v44 = vld [vmem:[#allocation76_spill] sm:$0xff] }
 0x26e   : > { %1544 = vrot.lane.b32.xlu0 %v676_v37, %s2681_s24  ;;  %v4242_v36 = vpop.permute.xlu1 %1444  ;;  %v2000_v58 = vsel %vm1991_vm10, %v1967_v14, %v1681_v6  ;;  %v4829_v37 = vld [vmem:[#allocation42_spill] sm:$0xff] }
 0x26f   : > { %2474 = vmatmul.msk.f32.vlgmr.msra.gmra.mxu1 %vm2062_vm11, %v2000_v58  ;;  %v1902_v33 = vsel %vm1892_vm6, %v1869_v20, %v4829_v37  ;;  %v2593_v6 = vld [vmem:[#allocation2 + $0x189] sm:$0xff]  ;;  %v1944_v20 = vsel %vm1925_vm7, %v4831_v44, %v4242_v36 }
 0x270   : > { %v1569_v9 = vpop.permute.xlu0 %1568  ;;  %v1935_v14 = vsel %vm1925_vm7, %v1902_v33, %v4186_v21  ;;  %v1943_v21 = vsel %vm1925_vm7, %v3886_v54, %v4228_v34  ;;  %v678_v33 = vld [vmem:[#allocation2 + $0x79] sm:$0xff] }
 0x271   : > { %v1975_v23 = vsel %vm1958_vm9, %v1942_v5, %v1569_v9 }
 0x272   : > { %v2008_v46 = vsel %vm1991_vm10, %v1975_v23, %v1697_v38 }
 0x273   : > { %2482 = vmatmul.msk.f32.vlgmr.msra.gmra.mxu2 %vm2062_vm11, %v2008_v46  ;;  %1450 = vrot.lane.b32.xlu2 %v661_v40, %s2680_s17  ;;  %v4830_v40 = vld [vmem:[#allocation31_spill] sm:$0xff] }
 0x274   : > { %1560 = vrot.lane.b32.xlu1 %v684_v50, %s2681_s24 }
 0x275   : > { %v1699_v22 = vpop.permute.xlu2 %1698 }
 0x276   : > { %1466 = vrot.lane.b32.xlu0 %v669_v8, %s2680_s17  ;;  %v1585_v16 = vpop.permute.xlu1 %1584 }
 0x277   : > { %v1983_v30 = vsel %vm1958_vm9, %v1950_v60, %v1585_v16  ;;  %v685_v60 = vld [vmem:[#allocation2 + $0xc9] sm:$0xff] }
 0x278   : > { %v1713_v42 = vpop.permute.xlu0 %1712  ;;  %v677_v16 = vld [vmem:[#allocation2 + $0x69] sm:$0xff] }
 0x279   : > { %v2016_v38 = vsel %vm1991_vm10, %v1983_v30, %v1713_v42  ;;  %v662_v42 = vld [vmem:[#allocation2 + $0x138] sm:$0xff] }
 0x27a   : > { %2490 = vmatmul.msk.f32.vlgmr.msra.gmra.mxu3 %vm2062_vm11, %v2016_v38 }
 0x27b   : > { %1688 = vrot.lane.b32.xlu2 %v716_v15, %s2682_s25 }
 0x27c   : > { %1672 = vrot.lane.b32.xlu1 %v708_v31, %s2682_s25 }
 0x27d   : > { %v1555_v29 = vpop.permute.xlu2 %1554 }
 0x27e   : > { %1578 = vrot.lane.b32.xlu0 %v693_v61, %s2681_s24  ;;  %v1537_v56 = vpop.permute.xlu1 %1536  ;;  %v1968_v58 = vsel %vm1958_vm9, %v1935_v14, %v1555_v29  ;;  %v709_v61 = vld [vmem:[#allocation2 + $0x6a] sm:$0xff]  ;;  %v670_v29 = vld [vmem:[#allocation2 + $0x198] sm:$0xff] }
 0x27f   : > { %v1959_v9 = vsel %vm1958_vm9, %v4106_v27, %v1537_v56  ;;  %v717_v56 = vld [vmem:[#allocation2 + $0xca] sm:$0xff] }
 0x280   : > { %v1459_v7 = vpop.permute.xlu0 %1458 }
 0x281   : > { %v1951_v54 = vsel %vm1925_vm7, %v3966_v52, %v1459_v7 }
 0x283   : > { %1706 = vrot.lane.b32.xlu2 %v725_v19, %s2682_s25 }
 0x284   : > { %1594 = vrot.lane.b32.xlu1 %v2593_v6, %s2681_s24  ;;  %v734_v6 = vld [vmem:[#allocation2 + $0x19a] sm:$0xff] }
 0x285   : > { %v1683_v5 = vpop.permute.xlu2 %1682 }
 0x286   : > { %1722 = vrot.lane.b32.xlu0 %v4830_v40, %s2682_s25  ;;  %v1665_v23 = vpop.permute.xlu1 %1664  ;;  %v2001_v50 = vsel %vm1991_vm10, %v1968_v58, %v1683_v5 }
 0x287   : > { %v1992_v46 = vsel %vm1991_vm10, %v1959_v9, %v1665_v23  ;;  %2475 = vmatmul.msk.f32.gmra.mxu1 %vm2062_vm11, %v2001_v50  ;;  %v671_v50 = vld [vmem:[#allocation2 + $0x1a0] sm:$0xff] }
 0x288   : > { %v1571_v8 = vpop.permute.xlu0 %1570  ;;  %2466 = vmatmul.msk.f32.vlgmr.msra.gmra.mxu0 %vm2062_vm11, %v1992_v46 }
 0x289   : > { %v1976_v27 = vsel %vm1958_vm9, %v1943_v21, %v1571_v8  ;;  %v663_v21 = vld [vmem:[#allocation2 + $0x140] sm:$0xff] }
 0x28a   : > { %v2009_v30 = vsel %vm1991_vm10, %v1976_v27, %v1699_v22  ;;  %v710_v8 = vld [vmem:[#allocation2 + $0x7a] sm:$0xff] }
 0x28b   : > { %2483 = vmatmul.msk.f32.gmra.mxu2 %vm2062_vm11, %v2009_v30  ;;  %1562 = vrot.lane.b32.xlu2 %v685_v60, %s2681_s24 }
 0x28c   : > { %1546 = vrot.lane.b32.xlu1 %v677_v16, %s2681_s24 }
 0x28d   : > { %v1701_v15 = vpop.permute.xlu2 %1700 }
 0x28e   : > { %1452 = vrot.lane.b32.xlu0 %v662_v42, %s2680_s17  ;;  %v1587_v34 = vpop.permute.xlu1 %1586  ;;  %v695_v42 = vld [vmem:[#allocation2 + $0x141] sm:$0xff] }
 0x28f   : > { %v1984_v38 = vsel %vm1958_vm9, %v1951_v54, %v1587_v34  ;;  %v703_v54 = vld [vmem:[#allocation2 + $0x1a1] sm:$0xff] }
 0x290   : > { %v1715_v31 = vpop.permute.xlu0 %1714 }
 0x291   : > { %v2017_v22 = vsel %vm1991_vm10, %v1984_v38, %v1715_v31 }
 0x292   : > { %2491 = vmatmul.msk.f32.gmra.mxu3 %vm2062_vm11, %v2017_v22 }
 0x293   : > { %1674 = vrot.lane.b32.xlu2 %v709_v61, %s2682_s25  ;;  %v735_v61 = vld [vmem:[#allocation2 + $0x1a2] sm:$0xff] }
 0x294   : > { %1468 = vrot.lane.b32.xlu1 %v670_v29, %s2680_s17  ;;  %v727_v29 = vld [vmem:[#allocation2 + $0x142] sm:$0xff] }
 0x295   : > { %v1557_v2 = vpop.permute.xlu2 %1556 }
 0x296   : > { %1690 = vrot.lane.b32.xlu0 %v717_v56, %s2682_s25  ;;  %v1539_v52 = vpop.permute.xlu1 %1538  ;;  %v1969_v31 = vsel %vm1958_vm9, %v4097_v0, %v1557_v2  ;;  %v679_v56 = vld [vmem:[#allocation2 + $0x81] sm:$0xff] }
 0x297   : > { %v1960_v19 = vsel %vm1958_vm9, %v3956_v43, %v1539_v52  ;;  %v686_v43 = vld [vmem:[#allocation2 + $0xd9] sm:$0xff] }
 0x298   : > { %v1461_v47 = vpop.permute.xlu0 %1460 }
 0x299   : > { %v1952_v36 = vsel %vm1925_vm7, %v3999_v48, %v1461_v47 }
 0x29b   : > { %1596 = vrot.lane.b32.xlu2 %v702_v28, %s2681_s24 }
 0x29c   : > { %1580 = vrot.lane.b32.xlu1 %v694_v3, %s2681_s24  ;;  %v711_v3 = vld [vmem:[#allocation2 + $0x82] sm:$0xff] }
 0x29d   : > { %v1669_v7 = vpop.permute.xlu2 %1668 }
 0x29e   : > { %1708 = vrot.lane.b32.xlu0 %v726_v24, %s2682_s25  ;;  %v1667_v26 = vpop.permute.xlu1 %1666 }
 0x29f   : > { %v1993_v17 = vsel %vm1991_vm10, %v1960_v19, %v1667_v26  ;;  %v719_v26 = vld [vmem:[#allocation2 + $0xe2] sm:$0xff] }
 0x2a0   : > { %v1573_v37 = vpop.permute.xlu0 %1572  ;;  %2467 = vmatmul.msk.f32.gmra.mxu0 %vm2062_vm11, %v1993_v17 }
 0x2a1   : > { %v1977_v14 = vsel %vm1958_vm9, %v1944_v20, %v1573_v37 }
 0x2a2   : > { %v2010_v58 = vsel %vm1991_vm10, %v1977_v14, %v1701_v15  ;;  %v718_v15 = vld [vmem:[#allocation2 + $0xda] sm:$0xff] }
 0x2a3   : > { %2484 = vmatmul.msk.f32.gmra.mxu2 %vm2062_vm11, %v2010_v58  ;;  %1548 = vrot.lane.b32.xlu2 %v678_v33, %s2681_s24 }
 0x2a4   : > { %1724 = vrot.lane.b32.xlu1 %v734_v6, %s2682_s25 }
 0x2a5   : > { %v1591_v5 = vpop.permute.xlu2 %1590 }
 0x2a6   : > { %1564 = vrot.lane.b32.xlu0 %v686_v43, %s2681_s24  ;;  %v1589_v9 = vpop.permute.xlu1 %1588 }
 0x2a7   : > { %v1985_v40 = vsel %vm1958_vm9, %v1952_v36, %v1589_v9 }
 0x2a8   : > { %v1717_v23 = vpop.permute.xlu0 %1716 }
 0x2a9   : > { %v2018_v46 = vsel %vm1991_vm10, %v1985_v40, %v1717_v23 }
 0x2aa   : > { %2492 = vmatmul.msk.f32.gmra.mxu3 %vm2062_vm11, %v2018_v46 }
 0x2ab   : > { %1470 = vrot.lane.b32.xlu2 %v671_v50, %s2680_s17 }
 0x2ac   : > { %1454 = vrot.lane.b32.xlu1 %v663_v21, %s2680_s17  ;;  %s279_s17 = sand.u32 1, %s2656_s19  }
 0x2ad   : > { %v1543_v60 = vpop.permute.xlu2 %1542  ;;  %s2308_s21 = scalar_lea.sflag [#allocation4], %s279_s17 }
 0x2ae   : > { %1676 = vrot.lane.b32.xlu0 %v710_v8, %s2682_s25  ;;  %v1541_v48 = vpop.permute.xlu1 %1540 }
 0x2af   : > { %v1961_v27 = vsel %vm1958_vm9, %v4122_v53, %v1541_v48 }
 0x2b0   : > { %v1447_v16 = vpop.permute.xlu0 %1446  ;;  %v1994_v30 = vsel %vm1991_vm10, %v1961_v27, %v1669_v7  ;;  %v687_v7 = vld [vmem:[#allocation2 + $0xe1] sm:$0xff] }
 0x2b1   : > { %2468 = vmatmul.msk.f32.gmra.mxu0 %vm2062_vm11, %v1994_v30  ;;  %v1945_v47 = vsel %vm1925_vm7, %v3891_v25, %v1447_v16 }
 0x2b3   : > { %1582 = vrot.lane.b32.xlu2 %v695_v42, %s2681_s24 }
 0x2b4   : > { %1692 = vrot.lane.b32.xlu1 %v718_v15, %s2682_s25 }
 0x2b5   : > { %v1465_v34 = vpop.permute.xlu2 %1464 }
 0x2b6   : > { %1598 = vrot.lane.b32.xlu0 %v703_v54, %s2681_s24  ;;  %v1463_v38 = vpop.permute.xlu1 %1462  ;;  %v1954_v9 = vsel %vm1925_vm7, %v4007_v1, %v1465_v34 }
 0x2b7   : > { %v1953_v19 = vsel %vm1925_vm7, %v3881_v13, %v1463_v38  ;;  %v1962_v13 = vsel %vm1958_vm9, %v4147_v32, %v1543_v60 }
 0x2b8   : > { %v1685_v53 = vpop.permute.xlu0 %1684  ;;  %v1986_v44 = vsel %vm1958_vm9, %v1953_v19, %v1591_v5 }
 0x2b9   : > { %v2002_v22 = vsel %vm1991_vm10, %v1969_v31, %v1685_v53 }
 0x2ba   : > { %2476 = vmatmul.msk.f32.gmra.mxu1 %vm2062_vm11, %v2002_v22 }
 0x2bb   : > { %1726 = vrot.lane.b32.xlu2 %v735_v61, %s2682_s25 }
 0x2bc   : > { %1710 = vrot.lane.b32.xlu1 %v727_v29, %s2682_s25 }
 0x2bd   : > { %v1577_v52 = vpop.permute.xlu2 %1576 }
 0x2be   : > { %1550 = vrot.lane.b32.xlu0 %v679_v56, %s2681_s24  ;;  %v1575_v28 = vpop.permute.xlu1 %1574 }
 0x2bf   : > { %v1978_v0 = vsel %vm1958_vm9, %v1945_v47, %v1575_v28 }
 0x2c0   : > { %v1703_v2 = vpop.permute.xlu0 %1702 }
 0x2c1   : > { %v2011_v24 = vsel %vm1991_vm10, %v1978_v0, %v1703_v2 }
 0x2c2   : > { %2485 = vmatmul.msk.f32.gmra.mxu2 %vm2062_vm11, %v2011_v24 }
 0x2c3   : > { %1678 = vrot.lane.b32.xlu2 %v711_v3, %s2682_s25 }
 0x2c4   : > { %1566 = vrot.lane.b32.xlu1 %v687_v7, %s2681_s24  ;;  %s2462_s24 = sshll.u32 %s279_s17, 8 }
 0x2c5   : > { %v1721_v25 = vpop.permute.xlu2 %1720  ;;  %s4388_s29 = scalar_lea.vmem [#allocation3], %s2462_s24 }
 0x2c6   : > { %1694 = vrot.lane.b32.xlu0 %v719_v26, %s2682_s25  ;;  %v1719_v17 = vpop.permute.xlu1 %1718  ;;  %s2321_s11 = sshll.u32 %s4388_s29, 4  ;;  %s2614_s25 = scalar_lea.hbm %s4554_s5, 512  ;;  %s2322_s11 = int_to_ptr.vmem [resolvable:$true] %s2321_s11 }
 0x2c7   : > { %v2019_v20 = vsel %vm1991_vm10, %v1986_v44, %v1719_v17  ;;  %p2616_p2 = scmp.lt.s32.totalorder %s2614_s25, %s2610_s15 }
 0x2c8   : > { %v1559_v37 = vpop.permute.xlu0 %1558  ;;  %2493 = vmatmul.msk.f32.gmra.mxu3 %vm2062_vm11, %v2019_v20 }
 0x2c9   : > { %v1970_v43 = vsel %vm1958_vm9, %v4194_v55, %v1559_v37  ;;  %p2617_p3 = por %p2616_p2, %p2615_p1 }
 0x2cb   : > { %p2618_p5 = pnand %p2617_p3, %p2613_p0 }
 0x2cd   : > { %v1451_v14 = vpop.permute.xlu2 %1450 }
 0x2ce   : > { %v1449_v33 = vpop.permute.xlu1 %1448  ;;  %v1947_v31 = vsel %vm1925_vm7, %v3820_v35, %v1451_v14 }
 0x2cf   : > { %v1946_v46 = vsel %vm1925_vm7, %v3925_v45, %v1449_v33  ;;  %v4383_v45 = vld [vmem:[%s4553_s4] ss:$0 sm:$0xff] }
 0x2d0   : > { %v1671_v6 = vpop.permute.xlu0 %1670  ;;  %v1979_v21 = vsel %vm1958_vm9, %v1946_v46, %v1577_v52 }
 0x2d1   : > { %v1995_v58 = vsel %vm1991_vm10, %v1962_v13, %v1671_v6 }
 0x2d2   : > { %2469 = vmatmul.msk.f32.gmra.mxu0 %vm2062_vm11, %v1995_v58 }
 0x2d5   : > { %v1689_v23 = vpop.permute.xlu2 %1688 }
 0x2d6   : > { %v1687_v36 = vpop.permute.xlu1 %1686 }
 0x2d7   : > { %v2003_v5 = vsel %vm1991_vm10, %v1970_v43, %v1687_v36 }
 0x2d8   : > { %v1593_v40 = vpop.permute.xlu0 %1592  ;;  %2477 = vmatmul.msk.f32.gmra.mxu1 %vm2062_vm11, %v2003_v5 }
 0x2d9   : > { %v1987_v32 = vsel %vm1958_vm9, %v1954_v9, %v1593_v40 }
 0x2da   : > { %v2020_v50 = vsel %vm1991_vm10, %v1987_v32, %v1721_v25 }
 0x2db   : > { %2494 = vmatmul.msk.f32.gmra.mxu3 %vm2062_vm11, %v2020_v50 }
 0x2dd   : > { %v1707_v60 = vpop.permute.xlu2 %1706 }
 0x2de   : > { %v1705_v55 = vpop.permute.xlu1 %1704 }
 0x2df   : > { %v2012_v8 = vsel %vm1991_vm10, %v1979_v21, %v1705_v55 }
 0x2e0   : > { %v1545_v1 = vpop.permute.xlu0 %1544  ;;  %2486 = vmatmul.msk.f32.gmra.mxu2 %vm2062_vm11, %v2012_v8 }
 0x2e1   : > { %v1963_v34 = vsel %vm1958_vm9, %v3994_v18, %v1545_v1 }
 0x2e5   : > { %v1563_v15 = vpop.permute.xlu2 %1562 }
 0x2e6   : > { %v1561_v48 = vpop.permute.xlu1 %1560  ;;  %v1972_v33 = vsel %vm1958_vm9, %v4141_v4, %v1563_v15 }
 0x2e7   : > { %v1971_v27 = vsel %vm1958_vm9, %v4210_v62, %v1561_v48 }
 0x2e8   : > { %v1467_v16 = vpop.permute.xlu0 %1466  ;;  %v2004_v30 = vsel %vm1991_vm10, %v1971_v27, %v1689_v23 }
 0x2e9   : > { %2478 = vmatmul.msk.f32.gmra.mxu1 %vm2062_vm11, %v2004_v30  ;;  %v1955_v18 = vsel %vm1925_vm7, %v4053_v57, %v1467_v16 }
 0x2ec   : > { %v2203_v42 = vpop.f32.mrf.mxu1 }
 0x2ed   : > { %v2204_v54 = vadd.f32 %v4383_v45, %v2203_v42  ;;  %v1675_v52 = vpop.permute.xlu2 %1674 }
 0x2ee   : > { %v1673_v62 = vpop.permute.xlu1 %1672 }
 0x2ef   : > { %2283 = vst [vmem:[%s4388_s29 + $0x40] sm:$0xff] %v2204_v54  ;;  %v1996_v38 = vsel %vm1991_vm10, %v1963_v34, %v1673_v62 }
 0x2f0   : > { %v1579_v53 = vpop.permute.xlu0 %1578  ;;  %2470 = vmatmul.msk.f32.gmra.mxu0 %vm2062_vm11, %v1996_v38 }
 0x2f1   : > { %v1980_v61 = vsel %vm1958_vm9, %v1947_v31, %v1579_v53 }
 0x2f2   : > { %v2013_v22 = vsel %vm1991_vm10, %v1980_v61, %v1707_v60 }
 0x2f3   : > { %2487 = vmatmul.msk.f32.gmra.mxu2 %vm2062_vm11, %v2013_v22 }
 0x2f5   : > { %v1597_v26 = vpop.permute.xlu2 %1596 }
 0x2f6   : > { %v2227_v29 = vpop.f32.mrf.mxu2  ;;  %v1595_v56 = vpop.permute.xlu1 %1594 }
 0x2f7   : > { %v2228_v47 = vadd.f32 %v4383_v45, %v2227_v29  ;;  %v1988_v35 = vsel %vm1958_vm9, %v1955_v18, %v1595_v56 }
 0x2f8   : > { %v1723_v28 = vpop.permute.xlu0 %1722 }
 0x2f9   : > { %2291 = vst [vmem:[%s4388_s29 + $0x80] sm:$0xff] %v2228_v47  ;;  %v2021_v0 = vsel %vm1991_vm10, %v1988_v35, %v1723_v28 }
 0x2fa   : > { %2495 = vmatmul.msk.f32.gmra.mxu3 %vm2062_vm11, %v2021_v0 }
 0x2fd   : > { %v2251_v2 = vpop.f32.mrf.mxu3  ;;  %v1549_v13 = vpop.permute.xlu2 %1548 }
 0x2fe   : > { %v2252_v3 = vadd.f32 %v4383_v45, %v2251_v2  ;;  %v1547_v24 = vpop.permute.xlu1 %1546 }
 0x2ff   : > { %v1964_v57 = vsel %vm1958_vm9, %v4152_v51, %v1547_v24 }
 0x300   : > { %2299 = vst [vmem:[%s4388_s29 + $0xc0] sm:$0xff] %v2252_v3  ;;  %v1453_v7 = vpop.permute.xlu0 %1452  ;;  %v1997_v19 = vsel %vm1991_vm10, %v1964_v57, %v1675_v52 }
 0x301   : > { %2471 = vmatmul.msk.f32.gmra.mxu0 %vm2062_vm11, %v1997_v19  ;;  %v1948_v6 = vsel %vm1925_vm7, %v3932_v39, %v1453_v7 }
 0x304   : > { %v2206_v25 = vpop.f32.mrf.mxu1 }
 0x305   : > { %v2179_v17 = vpop.f32.mrf.mxu0  ;;  %v2207_v44 = vadd.f32 %v4383_v45, %v2206_v25  ;;  %v1471_v23 = vpop.permute.xlu2 %1470 }
 0x306   : > { %v2180_v20 = vadd.f32 %v4383_v45, %v2179_v17  ;;  %v1469_v37 = vpop.permute.xlu1 %1468  ;;  %v1957_v38 = vsel %vm1925_vm7, %v4062_v12, %v1471_v23 }
 0x307   : > { %2284 = vst [vmem:[%s4388_s29 + $0x48] sm:$0xff] %v2207_v44  ;;  %v1956_v40 = vsel %vm1925_vm7, %v3920_v63, %v1469_v37  ;;  %v1965_v63 = vsel %vm1958_vm9, %v4170_v41, %v1549_v13 }
 0x308   : > { %2275 = vst [vmem:[%s4388_s29] sm:$0xff] %v2180_v20  ;;  %v1691_v51 = vpop.permute.xlu0 %1690  ;;  %v1989_v46 = vsel %vm1958_vm9, %v1956_v40, %v1597_v26 }
 0x309   : > { %v2005_v14 = vsel %vm1991_vm10, %v1972_v33, %v1691_v51 }
 0x30a   : > { %2479 = vmatmul.msk.f32.gmra.mxu1 %vm2062_vm11, %v2005_v14 }
 0x30d   : > { %v1583_v1 = vpop.permute.xlu2 %1582 }
 0x30e   : > { %v2230_v58 = vpop.f32.mrf.mxu2  ;;  %v1581_v43 = vpop.permute.xlu1 %1580 }
 0x30f   : > { %v2231_v36 = vadd.f32 %v4383_v45, %v2230_v58  ;;  %v1981_v5 = vsel %vm1958_vm9, %v1948_v6, %v1581_v43 }
 0x310   : > { %v1709_v9 = vpop.permute.xlu0 %1708 }
 0x311   : > { %2292 = vst [vmem:[%s4388_s29 + $0x88] sm:$0xff] %v2231_v36  ;;  %v2014_v4 = vsel %vm1991_vm10, %v1981_v5, %v1709_v9 }
 0x312   : > { %2488 = vmatmul.msk.f32.gmra.mxu2 %vm2062_vm11, %v2014_v4 }
 0x315   : > { %v2254_v32 = vpop.f32.mrf.mxu3  ;;  %v1727_v30 = vpop.permute.xlu2 %1726 }
 0x316   : > { %v2255_v39 = vadd.f32 %v4383_v45, %v2254_v32  ;;  %v1725_v50 = vpop.permute.xlu1 %1724 }
 0x317   : > { %v2022_v55 = vsel %vm1991_vm10, %v1989_v46, %v1725_v50 }
 0x318   : > { %2300 = vst [vmem:[%s4388_s29 + $0xc8] sm:$0xff] %v2255_v39  ;;  %v1565_v21 = vpop.permute.xlu0 %1564  ;;  %2496 = vmatmul.msk.f32.gmra.mxu3 %vm2062_vm11, %v2022_v55 }
 0x319   : > { %v1973_v42 = vsel %vm1958_vm9, %v4214_v10, %v1565_v21 }
 0x31d   : > { %v2182_v8 = vpop.f32.mrf.mxu0  ;;  %v1679_v47 = vpop.permute.xlu2 %1678 }
 0x31e   : > { %v2183_v60 = vadd.f32 %v4383_v45, %v2182_v8  ;;  %v1455_v48 = vpop.permute.xlu1 %1454 }
 0x31f   : > { %v1949_v10 = vsel %vm1925_vm7, %v3959_v11, %v1455_v48 }
 0x320   : > { %2276 = vst [vmem:[%s4388_s29 + $0x8] sm:$0xff] %v2183_v60  ;;  %v1677_v27 = vpop.permute.xlu0 %1676  ;;  %v1982_v22 = vsel %vm1958_vm9, %v1949_v10, %v1583_v1 }
 0x321   : > { %v1998_v16 = vsel %vm1991_vm10, %v1965_v63, %v1677_v27 }
 0x322   : > { %2472 = vmatmul.msk.f32.gmra.mxu0 %vm2062_vm11, %v1998_v16 }
 0x326   : > { %v2233_v15 = vpop.f32.mrf.mxu2  ;;  %v1693_v54 = vpop.permute.xlu1 %1692 }
 0x327   : > { %v2234_v34 = vadd.f32 %v4383_v45, %v2233_v15  ;;  %v2006_v62 = vsel %vm1991_vm10, %v1973_v42, %v1693_v54 }
 0x328   : > { %v1599_v41 = vpop.permute.xlu0 %1598  ;;  %2480 = vmatmul.msk.f32.gmra.mxu1 %vm2062_vm11, %v2006_v62 }
 0x329   : > { %2293 = vst [vmem:[%s4388_s29 + $0x90] sm:$0xff] %v2234_v34  ;;  %v1990_v31 = vsel %vm1958_vm9, %v1957_v38, %v1599_v41 }
 0x32a   : > { %v2023_v53 = vsel %vm1991_vm10, %v1990_v31, %v1727_v30 }
 0x32b   : > { %2497 = vmatmul.msk.f32.gmra.mxu3 %vm2062_vm11, %v2023_v53 }
 0x32d   : > { %v2257_v61 = vpop.f32.mrf.mxu3 }
 0x32e   : > { %v2258_v12 = vadd.f32 %v4383_v45, %v2257_v61  ;;  %v1711_v18 = vpop.permute.xlu1 %1710  ;;  %v2185_v29 = vpop.f32.mrf.mxu0 }
 0x32f   : > { %v2186_v56 = vadd.f32 %v4383_v45, %v2185_v29  ;;  %v2015_v52 = vsel %vm1991_vm10, %v1982_v22, %v1711_v18 }
 0x330   : > { %2301 = vst [vmem:[%s4388_s29 + $0xd0] sm:$0xff] %v2258_v12  ;;  %v1551_v35 = vpop.permute.xlu0 %1550  ;;  %2489 = vmatmul.msk.f32.gmra.mxu2 %vm2062_vm11, %v2015_v52 }
 0x331   : > { %2277 = vst [vmem:[%s4388_s29 + $0x10] sm:$0xff] %v2186_v56  ;;  %v1966_v11 = vsel %vm1958_vm9, %v4050_v59, %v1551_v35 }
 0x332   : > { %v1999_v28 = vsel %vm1991_vm10, %v1966_v11, %v1679_v47 }
 0x333   : > { %2473 = vmatmul.msk.f32.gmra.mxu0 %vm2062_vm11, %v1999_v28 }
 0x336   : > { %v1567_v0 = vpop.permute.xlu1 %1566 }
 0x337   : > { %v1974_v2 = vsel %vm1958_vm9, %v4224_v49, %v1567_v0  ;;  %v2209_v3 = vpop.f32.mrf.mxu1 }
 0x338   : > { %v2210_v24 = vadd.f32 %v4383_v45, %v2209_v3  ;;  %v1695_v57 = vpop.permute.xlu0 %1694 }
 0x339   : > { %v2007_v7 = vsel %vm1991_vm10, %v1974_v2, %v1695_v57 }
 0x33a   : > { %2285 = vst [vmem:[%s4388_s29 + $0x50] sm:$0xff] %v2210_v24  ;;  %2481 = vmatmul.msk.f32.gmra.mxu1 %vm2062_vm11, %v2007_v7 }
 0x345   : > { %v2236_v59 = vpop.f32.mrf.mxu2 }
 0x346   : > { %v2237_v19 = vadd.f32 %v4383_v45, %v2236_v59 }
 0x348   : > { %2294 = vst [vmem:[%s4388_s29 + $0x98] sm:$0xff] %v2237_v19 }
 0x34b   : > { %v2260_v26 = vpop.f32.mrf.mxu3 }
 0x34c   : > { %v2261_v25 = vadd.f32 %v4383_v45, %v2260_v26 }
 0x34e   : > { %2302 = vst [vmem:[%s4388_s29 + $0xd8] sm:$0xff] %v2261_v25 }
 0x34f   : > { %v2188_v49 = vpop.f32.mrf.mxu0 }
 0x350   : > { %v2189_v17 = vadd.f32 %v4383_v45, %v2188_v49 }
 0x352   : > { %2278 = vst [vmem:[%s4388_s29 + $0x18] sm:$0xff] %v2189_v17 }
 0x355   : > { %v2212_v44 = vpop.f32.mrf.mxu1 }
 0x356   : > { %v2213_v20 = vadd.f32 %v4383_v45, %v2212_v44 }
 0x358   : > { %2286 = vst [vmem:[%s4388_s29 + $0x58] sm:$0xff] %v2213_v20 }
 0x35e   : > { %v2263_v37 = vpop.f32.mrf.mxu3 }
 0x35f   : > { %v2264_v33 = vadd.f32 %v4383_v45, %v2263_v37 }
 0x361   : > { %2303 = vst [vmem:[%s4388_s29 + $0xe0] sm:$0xff] %v2264_v33 }
 0x363   : > { %v2239_v51 = vpop.f32.mrf.mxu2 }
 0x364   : > { %v2240_v14 = vadd.f32 %v4383_v45, %v2239_v51 }
 0x366   : > { %2295 = vst [vmem:[%s4388_s29 + $0xa0] sm:$0xff] %v2240_v14  ;;  %v2215_v13 = vpop.f32.mrf.mxu1 }
 0x367   : > { %v2216_v6 = vadd.f32 %v4383_v45, %v2215_v13 }
 0x369   : > { %2287 = vst [vmem:[%s4388_s29 + $0x60] sm:$0xff] %v2216_v6 }
 0x36d   : > { %v2191_v58 = vpop.f32.mrf.mxu0 }
 0x36e   : > { %v2192_v43 = vadd.f32 %v4383_v45, %v2191_v58 }
 0x370   : > { %2279 = vst [vmem:[%s4388_s29 + $0x20] sm:$0xff] %v2192_v43 }
 0x376   : > { %v2242_v36 = vpop.f32.mrf.mxu2 }
 0x377   : > { %v2243_v5 = vadd.f32 %v4383_v45, %v2242_v36 }
 0x379   : > { %2296 = vst [vmem:[%s4388_s29 + $0xa8] sm:$0xff] %v2243_v5 }
 0x37d   : > { %v2266_v9 = vpop.f32.mrf.mxu3 }
 0x37e   : > { %v2267_v4 = vadd.f32 %v4383_v45, %v2266_v9  ;;  %v2194_v40 = vpop.f32.mrf.mxu0 }
 0x37f   : > { %v2195_v23 = vadd.f32 %v4383_v45, %v2194_v40 }
 0x380   : > { %2304 = vst [vmem:[%s4388_s29 + $0xe8] sm:$0xff] %v2267_v4 }
 0x381   : > { %2280 = vst [vmem:[%s4388_s29 + $0x28] sm:$0xff] %v2195_v23 }
 0x387   : > { %v2218_v32 = vpop.f32.mrf.mxu1 }
 0x388   : > { %v2219_v39 = vadd.f32 %v4383_v45, %v2218_v32 }
 0x38a   : > { %2288 = vst [vmem:[%s4388_s29 + $0x68] sm:$0xff] %v2219_v39 }
 0x395   : > { %v2245_v50 = vpop.f32.mrf.mxu2 }
 0x396   : > { %v2246_v46 = vadd.f32 %v4383_v45, %v2245_v50 }
 0x398   : > { %2297 = vst [vmem:[%s4388_s29 + $0xb0] sm:$0xff] %v2246_v46 }
 0x39b   : > { %v2269_v55 = vpop.f32.mrf.mxu3 }
 0x39c   : > { %v2270_v21 = vadd.f32 %v4383_v45, %v2269_v55 }
 0x39e   : > { %2305 = vst [vmem:[%s4388_s29 + $0xf0] sm:$0xff] %v2270_v21 }
 0x39f   : > { %v2197_v8 = vpop.f32.mrf.mxu0 }
 0x3a0   : > { %v2198_v1 = vadd.f32 %v4383_v45, %v2197_v8 }
 0x3a2   : > { %2281 = vst [vmem:[%s4388_s29 + $0x30] sm:$0xff] %v2198_v1 }
 0x3a5   : > { %v2221_v60 = vpop.f32.mrf.mxu1 }
 0x3a6   : > { %v2222_v48 = vadd.f32 %v4383_v45, %v2221_v60 }
 0x3a8   : > { %2289 = vst [vmem:[%s4388_s29 + $0x70] sm:$0xff] %v2222_v48 }
 0x3ae   : > { %v2272_v63 = vpop.f32.mrf.mxu3 }
 0x3af   : > { %v2273_v27 = vadd.f32 %v4383_v45, %v2272_v63 }
 0x3b0   : > { %v2200_v16 = vpop.f32.mrf.mxu0 }
 0x3b1   : > { %2306 = vst [vmem:[%s4388_s29 + $0xf8] sm:$0xff] %v2273_v27  ;;  %v2201_v30 = vadd.f32 %v4383_v45, %v2200_v16 }
 0x3b3   : > { %2282 = vst [vmem:[%s4388_s29 + $0x38] sm:$0xff] %v2201_v30  ;;  %v2248_v42 = vpop.f32.mrf.mxu2 }
 0x3b4   : > { %v2249_v15 = vadd.f32 %v4383_v45, %v2248_v42 }
 0x3b6   : > { %2298 = vst [vmem:[%s4388_s29 + $0xb8] sm:$0xff] %v2249_v15 }
 0x3b7   : > { %v2224_v54 = vpop.f32.mrf.mxu1 }
 0x3b8   : > { %v2225_v34 = vadd.f32 %v4383_v45, %v2224_v54 }
 0x3ba   : > { %2290 = vst [vmem:[%s4388_s29 + $0x78] sm:$0xff] %v2225_v34 }
 0x3bb   : > { %2621 = shalt.err (!%p2618_p5)
}
 0x3bc   : > { %s2683_s17 = smov 128  }
 0x3bd   : > { %2520 = dma.vmem_to_hbm [thread:$0]  (%p2754_p4), %s2322_s11, 4096, %s2324_s12, %s2308_s21, %s2683_s17, %s2683_s17, %s2676_s13  }
 0x3be PF: > { %p2526_p6 = scmp.ge.s32.totalorder %s2672_s23, 2  ;;  %s2338_s29 = sand.u32 1, %s2652_s18  }
 0x3bf   : > { %s2339_s8 = scalar_lea.sflag [#allocation4], %s2338_s29 }
 0x3c0   : > { %p2523_p7 = pnand %p2526_p6, %p2761_p8 }
 0x3c2   : > { %p2524_p9 = pneg %p2523_p7 }
 0x3c4   : > { %2647 = dma.done.wait (%p2524_p9), %s2339_s8, 4096  }
 0x3c5   : > { %2649 = vsyncadd (%p2524_p9), %s2339_s8, 4294963200  ;;  %s18_s23 = sadd.s32 1, %s2672_s23   ;;  %s4832_s18 = smov %s2656_s19 }
 0x3c6   : > { %p15_p10 = scmp.ge.s32.totalorder %s18_s23, 4   ;;  %s4833_s19 = smov %s2660_s20 }
 0x3c7   : > { %s4834_s20 = smov %s2767_s6  ;;  %s4835_s21 = smov %s2668_s22 }
 0x3c8   : > { %s4836_s22 = smov %s4838_s26  ;;  %17 = sbr.rel (!%p15_p10) target bundleno = 4 (0x4), region = 102 }
 0x3cd   :  { %2345 = vsyncpa [#allocation4], 1 }
 0x3ce   :  { %2347 = vsyncpa [#allocation4 + $0x1], 1 }

</bundles_post_ra>
